<compile_context>
chip_gen: v7x
topology: tpu7x:2x2x1
jax: 0.10.0
libtpu: 0.0.40
codegen_flags: <defaults>
</compile_context>

<pallas_src>
import functools

import jax
import jax.numpy as jnp
from jax.experimental import pallas as pl
from jax.experimental.pallas import tpu as pltpu


def _dfsmn_kernel(x_ref, dwm_ref, msh_ref, w1_ref, b1_ref, w2_ref, b2_ref,
                  out_ref, xpad_ref, *, T, K, L, dilation, bt):
    """Fused DFSMN layer for a tile of `bt` batch elements, (C, T) layout."""
    C = x_ref.shape[1]
    dt = x_ref.dtype
    lp = L * dilation                     # left zero pad (elements)
    rp = (K - 1 - L) * dilation           # right zero pad (elements)

    # ---- in-kernel zero padding along time into a VMEM scratch.
    # Pad columns are rewritten every grid step (cheap: (lp+rp) lanes) so this
    # stays correct when the "parallel" grid axis is sharded across cores.
    if lp > 0:
        xpad_ref[:, :, :lp] = jnp.zeros((bt, C, lp), dt)
    if rp > 0:
        xpad_ref[:, :, lp + T:] = jnp.zeros((bt, C, rp), dt)
    xpad_ref[:, :, lp:lp + T] = x_ref[...]

    dwm = dwm_ref[...]            # (C, K) f32, depthwise weights * BN scale
    msh = msh_ref[...]            # (C, 1) f32, BN shift + conv bias * scale

    # --- memory branch: depthwise dilated conv over time (K small, unrolled).
    # Tap slices are static lane shifts of the padded VMEM scratch.
    acc = None
    for k in range(K):
        off = k * dilation
        tap = xpad_ref[:, :, off:off + T].astype(jnp.float32)   # (bt, C, T)
        contrib = tap * dwm[:, k:k + 1][None, :, :]
        acc = contrib if acc is None else acc + contrib

    x_res = x_ref[...].astype(jnp.float32)                      # residual
    # folded BN (+conv bias) -> ReLU -> residual add, all in f32
    mem = jnp.maximum(acc + msh[None, :, :], 0.0) + x_res       # (bt, C, T)

    # --- fc_trans branch: two pointwise convs == matmuls over channels.
    w1 = w1_ref[...]              # (H, C)  matmul dtype (bf16 or f32)
    w2 = w2_ref[...]              # (C, H)
    b1 = b1_ref[...]              # (H, 1)  f32 (bias * s + o folded)
    b2 = b2_ref[...]              # (C, 1)  f32
    mm_dtype = w1.dtype
    mem_mm = mem.astype(mm_dtype)                               # one cast

    for b in range(bt):           # small, unrolled; matmul fill dim is T
        h = jnp.dot(w1, mem_mm[b], preferred_element_type=jnp.float32)  # (H,T)
        h = jnp.maximum(h + b1, 0.0)
        z = jnp.dot(w2, h.astype(mm_dtype),
                    preferred_element_type=jnp.float32)                  # (C,T)
        z = jnp.maximum(z + b2, 0.0)
        out_ref[b] = (z + mem[b]).astype(out_ref.dtype)


def _fold_bn(gamma, beta, mean, var, eps=1e-5):
    scale = gamma / jnp.sqrt(var + eps)
    shift = beta - mean * scale
    return scale, shift


def dfsmn_layer_bn(x_bct, params, *, left, right, dilation,
                   batch_tile=2, matmul_dtype=jnp.bfloat16):
    """x_bct: (B, C, T) in PyTorch Conv1d layout. Returns (B, C, T)."""
    B, C, T = x_bct.shape
    H = params["w1"].shape[0]
    K = left + right + 1
    T_pad = T + (left + right) * dilation

    # largest batch tile <= requested that divides B
    bt = max(d for d in range(1, min(batch_tile, B) + 1) if B % d == 0)

    # ---- glue: BN/bias folding on the (small) weights ----
    ms, mo = _fold_bn(*params["bn_m"])
    dwm = (params["dw_w"][:, 0, :] * ms[:, None]).astype(jnp.float32)   # (C,K)
    msh = ((mo + params["dw_b"] * ms)[:, None]).astype(jnp.float32)     # (C,1)

    s1, o1 = _fold_bn(*params["bn1"])
    w1s = (params["w1"] * s1[:, None]).astype(matmul_dtype)             # (H,C)
    b1s = ((o1 + params["b1"] * s1)[:, None]).astype(jnp.float32)       # (H,1)

    s2, o2 = _fold_bn(*params["bn2"])
    w2s = (params["w2"] * s2[:, None]).astype(matmul_dtype)             # (C,H)
    b2s = ((o2 + params["b2"] * s2)[:, None]).astype(jnp.float32)       # (C,1)

    kernel = functools.partial(_dfsmn_kernel, T=T, K=K, L=left,
                               dilation=dilation, bt=bt)

    itemsize_x = x_bct.dtype.itemsize
    itemsize_w = jnp.dtype(matmul_dtype).itemsize
    flops = 2 * B * T * C * K + 2 * (2 * B * T * C * H)
    bytes_accessed = (2 * B * C * T * itemsize_x
                      + (w1s.size + w2s.size) * itemsize_w
                      + (dwm.size + msh.size + b1s.size + b2s.size) * 4)
    cost = pl.CostEstimate(flops=int(flops), transcendentals=0,
                           bytes_accessed=int(bytes_accessed))

    out = pl.pallas_call(
        kernel,
        out_shape=jax.ShapeDtypeStruct((B, C, T), x_bct.dtype),
        grid_spec=pltpu.PrefetchScalarGridSpec(
            num_scalar_prefetch=0,
            grid=(B // bt,),
            in_specs=[
                pl.BlockSpec((bt, C, T), lambda i: (i, 0, 0)),   # unpadded x
                pl.BlockSpec((C, K), lambda i: (0, 0)),          # dw * scale
                pl.BlockSpec((C, 1), lambda i: (0, 0)),          # mem shift
                pl.BlockSpec((H, C), lambda i: (0, 0)),          # fc1 weight
                pl.BlockSpec((H, 1), lambda i: (0, 0)),          # fc1 shift
                pl.BlockSpec((C, H), lambda i: (0, 0)),          # fc2 weight
                pl.BlockSpec((C, 1), lambda i: (0, 0)),          # fc2 shift
            ],
            out_specs=pl.BlockSpec((bt, C, T), lambda i: (i, 0, 0)),
            scratch_shapes=[pltpu.VMEM((bt, C, T_pad), x_bct.dtype)],
        ),
        compiler_params=pltpu.CompilerParams(
            dimension_semantics=("parallel",),
            vmem_limit_bytes=64 * 1024 * 1024,
        ),
        cost_estimate=cost,
    )(x_bct, dwm, msh, w1s, b1s, w2s, b2s)
    return out


def _reference(x_bct, params, *, left, right, dilation):
    """Pure-JAX reference of the PyTorch forward (eval mode, f32)."""
    B, C, T = x_bct.shape
    K = left + right + 1
    xp = jnp.pad(x_bct, ((0, 0), (0, 0), (left * dilation, right * dilation)))

    def bn(y, p):
        g, be, m, v = p
        inv = g / jnp.sqrt(v + 1e-5)
        return (y - m[None, :, None]) * inv[None, :, None] + be[None, :, None]

    conv = jnp.zeros((B, C, T), jnp.float32)
    for k in range(K):
        off = k * dilation
        conv = conv + params["dw_w"][None, :, 0, k, None] * xp[:, :, off:off + T]
    conv = conv + params["dw_b"][None, :, None]
    mem = jax.nn.relu(bn(conv, params["bn_m"])) + x_bct

    h = jnp.einsum("hc,bct->bht", params["w1"], mem) + params["b1"][None, :, None]
    h = jax.nn.relu(bn(h, params["bn1"]))
    z = jnp.einsum("ch,bht->bct", params["w2"], h) + params["b2"][None, :, None]
    z = jax.nn.relu(bn(z, params["bn2"]))
    return z + mem


def _init_params(key, hidden_size, backbone_memory_size, left, right):
    C, H, K = backbone_memory_size, hidden_size, left + right + 1
    ks = jax.random.split(key, 12)

    def bn_params(k, n):
        k1, k2, k3, k4 = jax.random.split(k, 4)
        gamma = 1.0 + 0.1 * jax.random.normal(k1, (n,), jnp.float32)
        beta = 0.1 * jax.random.normal(k2, (n,), jnp.float32)
        mean = 0.1 * jax.random.normal(k3, (n,), jnp.float32)
        var = jax.random.uniform(k4, (n,), jnp.float32, 0.5, 1.5)
        return (gamma, beta, mean, var)

    return {
        "dw_w": 0.3 * jax.random.normal(ks[0], (C, 1, K), jnp.float32),
        "dw_b": 0.1 * jax.random.normal(ks[1], (C,), jnp.float32),
        "bn_m": bn_params(ks[2], C),
        "w1": 0.2 * jax.random.normal(ks[3], (H, C), jnp.float32),
        "b1": 0.1 * jax.random.normal(ks[4], (H,), jnp.float32),
        "bn1": bn_params(ks[5], H),
        "w2": 0.2 * jax.random.normal(ks[6], (C, H), jnp.float32),
        "b2": 0.1 * jax.random.normal(ks[7], (C,), jnp.float32),
        "bn2": bn_params(ks[8], C),
    }


if __name__ == "__main__":
    # Small shapes consistent with the module's Conv1d forward: (B, C, T).
    # T=128 keeps the time/lane dimension dense while remaining tiny overall.
    hidden_size = 64           # H
    backbone_memory_size = 32  # C
    left, right, dilation = 3, 2, 2
    B, T = 4, 128

    key = jax.random.PRNGKey(0)
    k_x, k_p = jax.random.split(key)
    x = jax.random.normal(k_x, (B, backbone_memory_size, T), jnp.float32)
    params = _init_params(k_p, hidden_size, backbone_memory_size, left, right)

    ref = _reference(x, params, left=left, right=right, dilation=dilation)

    # Strict check: f32 matmul path matches the module's f32 semantics.
    out_f32 = dfsmn_layer_bn(x, params, left=left, right=right,
                             dilation=dilation, batch_tile=2,
                             matmul_dtype=jnp.float32)
    out_f32 = jax.block_until_ready(out_f32)
    assert out_f32.shape == (B, backbone_memory_size, T)
    assert jnp.allclose(out_f32, ref, atol=1e-3, rtol=1e-3), \
        float(jnp.max(jnp.abs(out_f32 - ref)))

    # Fast path: bf16 MXU matmuls with f32 accumulation (looser tolerance).
    out_bf16 = dfsmn_layer_bn(x, params, left=left, right=right,
                              dilation=dilation, batch_tile=2,
                              matmul_dtype=jnp.bfloat16)
    out_bf16 = jax.block_until_ready(out_bf16)
    assert out_bf16.shape == (B, backbone_memory_size, T)
    assert jnp.allclose(out_bf16, ref, atol=1e-1, rtol=1e-1), \
        float(jnp.max(jnp.abs(out_bf16 - ref)))

    print("KERNEL_OK")
</pallas_src>

<mosaic_0001>
module attributes {stable_mosaic.version = 11 : i64} {
  func.func @_dfsmn_kernel(%arg0: i32, %arg1: memref<2x32x128xf32, #tpu.memory_space<vmem>>, %arg2: memref<32x6xf32, #tpu.memory_space<vmem>>, %arg3: memref<32x1xf32, #tpu.memory_space<vmem>>, %arg4: memref<64x32xf32, #tpu.memory_space<vmem>>, %arg5: memref<64x1xf32, #tpu.memory_space<vmem>>, %arg6: memref<32x64xf32, #tpu.memory_space<vmem>>, %arg7: memref<32x1xf32, #tpu.memory_space<vmem>>, %arg8: memref<2x32x128xf32, #tpu.memory_space<vmem>>, %arg9: memref<2x32x138xf32, #tpu.memory_space<vmem>>) attributes {dimension_semantics = [#tpu.dimension_semantics<parallel>], iteration_bounds = array<i64: 2>, scalar_prefetch = 0 : i64, scratch_operands = 1 : i64, tpu.core_type = #tpu.core_type<tc>, window_params = [{transform_indices = @transform_0, window_bounds = array<i64: 2, 32, 128>}, {pipeline_mode = #tpu.pipeline_mode<synchronous>, transform_indices = @transform_1, window_bounds = array<i64: 32, 6>}, {pipeline_mode = #tpu.pipeline_mode<synchronous>, transform_indices = @transform_2, window_bounds = array<i64: 32, 1>}, {pipeline_mode = #tpu.pipeline_mode<synchronous>, transform_indices = @transform_3, window_bounds = array<i64: 64, 32>}, {pipeline_mode = #tpu.pipeline_mode<synchronous>, transform_indices = @transform_4, window_bounds = array<i64: 64, 1>}, {pipeline_mode = #tpu.pipeline_mode<synchronous>, transform_indices = @transform_5, window_bounds = array<i64: 32, 64>}, {pipeline_mode = #tpu.pipeline_mode<synchronous>, transform_indices = @transform_6, window_bounds = array<i64: 32, 1>}, {transform_indices = @transform_7, window_bounds = array<i64: 2, 32, 128>}]} {
    %cst = arith.constant 0.000000e+00 : f32
    %0 = vector.broadcast %cst : f32 to vector<2x32x6xf32>
    %c0 = arith.constant 0 : index
    %c0_0 = arith.constant 0 : index
    %c0_1 = arith.constant 0 : index
    %1 = vector.load %arg9[%c0, %c0_0, %c0_1] : memref<2x32x138xf32, #tpu.memory_space<vmem>>, vector<2x32x6xf32>
    tpu.vector_store %arg9[%c0, %c0_0, %c0_1], %0 {strides = array<i32>} : memref<2x32x138xf32, #tpu.memory_space<vmem>>, vector<2x32x6xf32>,
    %cst_2 = arith.constant 0.000000e+00 : f32
    %2 = vector.broadcast %cst_2 : f32 to vector<2x32x4xf32>
    %c0_3 = arith.constant 0 : index
    %c0_4 = arith.constant 0 : index
    %c134 = arith.constant 134 : index
    %3 = vector.load %arg9[%c0_3, %c0_4, %c134] : memref<2x32x138xf32, #tpu.memory_space<vmem>>, vector<2x32x4xf32>
    tpu.vector_store %arg9[%c0_3, %c0_4, %c134], %2 {strides = array<i32>} : memref<2x32x138xf32, #tpu.memory_space<vmem>>, vector<2x32x4xf32>,
    %c0_5 = arith.constant 0 : index
    %c0_6 = arith.constant 0 : index
    %c0_7 = arith.constant 0 : index
    %4 = vector.load %arg1[%c0_5, %c0_6, %c0_7] : memref<2x32x128xf32, #tpu.memory_space<vmem>>, vector<2x32x128xf32>
    %c0_8 = arith.constant 0 : index
    %c0_9 = arith.constant 0 : index
    %c6 = arith.constant 6 : index
    %5 = vector.load %arg9[%c0_8, %c0_9, %c6] : memref<2x32x138xf32, #tpu.memory_space<vmem>>, vector<2x32x128xf32>
    tpu.vector_store %arg9[%c0_8, %c0_9, %c6], %4 {strides = array<i32>} : memref<2x32x138xf32, #tpu.memory_space<vmem>>, vector<2x32x128xf32>,
    %c0_10 = arith.constant 0 : index
    %c0_11 = arith.constant 0 : index
    %6 = vector.load %arg2[%c0_10, %c0_11] : memref<32x6xf32, #tpu.memory_space<vmem>>, vector<32x6xf32>
    %c0_12 = arith.constant 0 : index
    %c0_13 = arith.constant 0 : index
    %7 = vector.load %arg3[%c0_12, %c0_13] : memref<32x1xf32, #tpu.memory_space<vmem>>, vector<32x1xf32>
    %c0_14 = arith.constant 0 : index
    %c0_15 = arith.constant 0 : index
    %c0_16 = arith.constant 0 : index
    %8 = vector.load %arg9[%c0_14, %c0_15, %c0_16] : memref<2x32x138xf32, #tpu.memory_space<vmem>>, vector<2x32x128xf32>
    %9 = vector.extract_strided_slice %6 {offsets = [0, 0], sizes = [32, 1], strides = [1, 1]} : vector<32x6xf32> to vector<32x1xf32>
    %10 = vector.shape_cast %9 : vector<32x1xf32> to vector<1x32x1xf32>
    %11 = vector.broadcast %10 : vector<1x32x1xf32> to vector<2x32x128xf32>
    %12 = arith.mulf %8, %11 : vector<2x32x128xf32>
    %c0_17 = arith.constant 0 : index
    %c0_18 = arith.constant 0 : index
    %c2 = arith.constant 2 : index
    %13 = vector.load %arg9[%c0_17, %c0_18, %c2] : memref<2x32x138xf32, #tpu.memory_space<vmem>>, vector<2x32x128xf32>
    %14 = vector.extract_strided_slice %6 {offsets = [0, 1], sizes = [32, 1], strides = [1, 1]} : vector<32x6xf32> to vector<32x1xf32>
    %15 = vector.shape_cast %14 : vector<32x1xf32> to vector<1x32x1xf32>
    %16 = vector.broadcast %15 : vector<1x32x1xf32> to vector<2x32x128xf32>
    %17 = arith.mulf %13, %16 : vector<2x32x128xf32>
    %18 = arith.addf %12, %17 : vector<2x32x128xf32>
    %c0_19 = arith.constant 0 : index
    %c0_20 = arith.constant 0 : index
    %c4 = arith.constant 4 : index
    %19 = vector.load %arg9[%c0_19, %c0_20, %c4] : memref<2x32x138xf32, #tpu.memory_space<vmem>>, vector<2x32x128xf32>
    %20 = vector.extract_strided_slice %6 {offsets = [0, 2], sizes = [32, 1], strides = [1, 1]} : vector<32x6xf32> to vector<32x1xf32>
    %21 = vector.shape_cast %20 : vector<32x1xf32> to vector<1x32x1xf32>
    %22 = vector.broadcast %21 : vector<1x32x1xf32> to vector<2x32x128xf32>
    %23 = arith.mulf %19, %22 : vector<2x32x128xf32>
    %24 = arith.addf %18, %23 : vector<2x32x128xf32>
    %c0_21 = arith.constant 0 : index
    %c0_22 = arith.constant 0 : index
    %c6_23 = arith.constant 6 : index
    %25 = vector.load %arg9[%c0_21, %c0_22, %c6_23] : memref<2x32x138xf32, #tpu.memory_space<vmem>>, vector<2x32x128xf32>
    %26 = vector.extract_strided_slice %6 {offsets = [0, 3], sizes = [32, 1], strides = [1, 1]} : vector<32x6xf32> to vector<32x1xf32>
    %27 = vector.shape_cast %26 : vector<32x1xf32> to vector<1x32x1xf32>
    %28 = vector.broadcast %27 : vector<1x32x1xf32> to vector<2x32x128xf32>
    %29 = arith.mulf %25, %28 : vector<2x32x128xf32>
    %30 = arith.addf %24, %29 : vector<2x32x128xf32>
    %c0_24 = arith.constant 0 : index
    %c0_25 = arith.constant 0 : index
    %c8 = arith.constant 8 : index
    %31 = vector.load %arg9[%c0_24, %c0_25, %c8] : memref<2x32x138xf32, #tpu.memory_space<vmem>>, vector<2x32x128xf32>
    %32 = vector.extract_strided_slice %6 {offsets = [0, 4], sizes = [32, 1], strides = [1, 1]} : vector<32x6xf32> to vector<32x1xf32>
    %33 = vector.shape_cast %32 : vector<32x1xf32> to vector<1x32x1xf32>
    %34 = vector.broadcast %33 : vector<1x32x1xf32> to vector<2x32x128xf32>
    %35 = arith.mulf %31, %34 : vector<2x32x128xf32>
    %36 = arith.addf %30, %35 : vector<2x32x128xf32>
    %c0_26 = arith.constant 0 : index
    %c0_27 = arith.constant 0 : index
    %c10 = arith.constant 10 : index
    %37 = vector.load %arg9[%c0_26, %c0_27, %c10] : memref<2x32x138xf32, #tpu.memory_space<vmem>>, vector<2x32x128xf32>
    %38 = vector.extract_strided_slice %6 {offsets = [0, 5], sizes = [32, 1], strides = [1, 1]} : vector<32x6xf32> to vector<32x1xf32>
    %39 = vector.shape_cast %38 : vector<32x1xf32> to vector<1x32x1xf32>
    %40 = vector.broadcast %39 : vector<1x32x1xf32> to vector<2x32x128xf32>
    %41 = arith.mulf %37, %40 : vector<2x32x128xf32>
    %42 = arith.addf %36, %41 : vector<2x32x128xf32>
    %c0_28 = arith.constant 0 : index
    %c0_29 = arith.constant 0 : index
    %c0_30 = arith.constant 0 : index
    %43 = vector.load %arg1[%c0_28, %c0_29, %c0_30] : memref<2x32x128xf32, #tpu.memory_space<vmem>>, vector<2x32x128xf32>
    %44 = vector.shape_cast %7 : vector<32x1xf32> to vector<1x32x1xf32>
    %45 = vector.broadcast %44 : vector<1x32x1xf32> to vector<2x32x128xf32>
    %46 = arith.addf %42, %45 : vector<2x32x128xf32>
    %cst_31 = arith.constant 0.000000e+00 : f32
    %47 = vector.broadcast %cst_31 : f32 to vector<2x32x128xf32>
    %48 = arith.maximumf %46, %47 : vector<2x32x128xf32>
    %49 = arith.addf %48, %43 : vector<2x32x128xf32>
    %c0_32 = arith.constant 0 : index
    %c0_33 = arith.constant 0 : index
    %50 = vector.load %arg4[%c0_32, %c0_33] : memref<64x32xf32, #tpu.memory_space<vmem>>, vector<64x32xf32>
    %c0_34 = arith.constant 0 : index
    %c0_35 = arith.constant 0 : index
    %51 = vector.load %arg6[%c0_34, %c0_35] : memref<32x64xf32, #tpu.memory_space<vmem>>, vector<32x64xf32>
    %c0_36 = arith.constant 0 : index
    %c0_37 = arith.constant 0 : index
    %52 = vector.load %arg5[%c0_36, %c0_37] : memref<64x1xf32, #tpu.memory_space<vmem>>, vector<64x1xf32>
    %c0_38 = arith.constant 0 : index
    %c0_39 = arith.constant 0 : index
    %53 = vector.load %arg7[%c0_38, %c0_39] : memref<32x1xf32, #tpu.memory_space<vmem>>, vector<32x1xf32>
    %54 = vector.extract_strided_slice %49 {offsets = [0, 0, 0], sizes = [1, 32, 128], strides = [1, 1, 1]} : vector<2x32x128xf32> to vector<1x32x128xf32>
    %55 = vector.shape_cast %54 : vector<1x32x128xf32> to vector<32x128xf32>
    %cst_40 = arith.constant dense<0.000000e+00> : vector<64x128xf32>
    %56 = tpu.matmul %50, %55, %cst_40 {dimension_numbers = #tpu.dot_dimension_numbers<[1], [0], [0], [1], [0, 0, 1, 1], [], []>} : vector<64x32xf32>, vector<32x128xf32>, vector<64x128xf32> -> vector<64x128xf32>
    %57 = vector.broadcast %52 : vector<64x1xf32> to vector<64x128xf32>
    %58 = arith.addf %56, %57 : vector<64x128xf32>
    %cst_41 = arith.constant 0.000000e+00 : f32
    %59 = vector.broadcast %cst_41 : f32 to vector<64x128xf32>
    %60 = arith.maximumf %58, %59 : vector<64x128xf32>
    %cst_42 = arith.constant dense<0.000000e+00> : vector<32x128xf32>
    %61 = tpu.matmul %51, %60, %cst_42 {dimension_numbers = #tpu.dot_dimension_numbers<[1], [0], [0], [1], [0, 0, 1, 1], [], []>} : vector<32x64xf32>, vector<64x128xf32>, vector<32x128xf32> -> vector<32x128xf32>
    %62 = vector.broadcast %53 : vector<32x1xf32> to vector<32x128xf32>
    %63 = arith.addf %61, %62 : vector<32x128xf32>
    %cst_43 = arith.constant 0.000000e+00 : f32
    %64 = vector.broadcast %cst_43 : f32 to vector<32x128xf32>
    %65 = arith.maximumf %63, %64 : vector<32x128xf32>
    %66 = vector.extract_strided_slice %49 {offsets = [0, 0, 0], sizes = [1, 32, 128], strides = [1, 1, 1]} : vector<2x32x128xf32> to vector<1x32x128xf32>
    %67 = vector.shape_cast %66 : vector<1x32x128xf32> to vector<32x128xf32>
    %68 = arith.addf %65, %67 : vector<32x128xf32>
    %c0_44 = arith.constant 0 : index
    %c0_45 = arith.constant 0 : index
    %c0_46 = arith.constant 0 : index
    %69 = vector.load %arg8[%c0_44, %c0_45, %c0_46] : memref<2x32x128xf32, #tpu.memory_space<vmem>>, vector<1x32x128xf32>
    %70 = vector.shape_cast %69 : vector<1x32x128xf32> to vector<32x128xf32>
    %71 = vector.shape_cast %68 : vector<32x128xf32> to vector<1x32x128xf32>
    tpu.vector_store %arg8[%c0_44, %c0_45, %c0_46], %71 {strides = array<i32>} : memref<2x32x128xf32, #tpu.memory_space<vmem>>, vector<1x32x128xf32>,
    %72 = vector.extract_strided_slice %49 {offsets = [1, 0, 0], sizes = [1, 32, 128], strides = [1, 1, 1]} : vector<2x32x128xf32> to vector<1x32x128xf32>
    %73 = vector.shape_cast %72 : vector<1x32x128xf32> to vector<32x128xf32>
    %cst_47 = arith.constant dense<0.000000e+00> : vector<64x128xf32>
    %74 = tpu.matmul %50, %73, %cst_47 {dimension_numbers = #tpu.dot_dimension_numbers<[1], [0], [0], [1], [0, 0, 1, 1], [], []>} : vector<64x32xf32>, vector<32x128xf32>, vector<64x128xf32> -> vector<64x128xf32>
    %75 = vector.broadcast %52 : vector<64x1xf32> to vector<64x128xf32>
    %76 = arith.addf %74, %75 : vector<64x128xf32>
    %cst_48 = arith.constant 0.000000e+00 : f32
    %77 = vector.broadcast %cst_48 : f32 to vector<64x128xf32>
    %78 = arith.maximumf %76, %77 : vector<64x128xf32>
    %cst_49 = arith.constant dense<0.000000e+00> : vector<32x128xf32>
    %79 = tpu.matmul %51, %78, %cst_49 {dimension_numbers = #tpu.dot_dimension_numbers<[1], [0], [0], [1], [0, 0, 1, 1], [], []>} : vector<32x64xf32>, vector<64x128xf32>, vector<32x128xf32> -> vector<32x128xf32>
    %80 = vector.broadcast %53 : vector<32x1xf32> to vector<32x128xf32>
    %81 = arith.addf %79, %80 : vector<32x128xf32>
    %cst_50 = arith.constant 0.000000e+00 : f32
    %82 = vector.broadcast %cst_50 : f32 to vector<32x128xf32>
    %83 = arith.maximumf %81, %82 : vector<32x128xf32>
    %84 = vector.extract_strided_slice %49 {offsets = [1, 0, 0], sizes = [1, 32, 128], strides = [1, 1, 1]} : vector<2x32x128xf32> to vector<1x32x128xf32>
    %85 = vector.shape_cast %84 : vector<1x32x128xf32> to vector<32x128xf32>
    %86 = arith.addf %83, %85 : vector<32x128xf32>
    %c1 = arith.constant 1 : index
    %c0_51 = arith.constant 0 : index
    %c0_52 = arith.constant 0 : index
    %87 = vector.load %arg8[%c1, %c0_51, %c0_52] : memref<2x32x128xf32, #tpu.memory_space<vmem>>, vector<1x32x128xf32>
    %88 = vector.shape_cast %87 : vector<1x32x128xf32> to vector<32x128xf32>
    %89 = vector.shape_cast %86 : vector<32x128xf32> to vector<1x32x128xf32>
    tpu.vector_store %arg8[%c1, %c0_51, %c0_52], %89 {strides = array<i32>} : memref<2x32x128xf32, #tpu.memory_space<vmem>>, vector<1x32x128xf32>,
    return
  }
  func.func @transform_0(%arg0: i32) -> (i32, i32, i32) {
    %c0_i32 = arith.constant 0 : i32
    %c0_i32_0 = arith.constant 0 : i32
    %c0_i32_1 = arith.constant 0 : i32
    return %arg0, %c0_i32, %c0_i32_0 : i32, i32, i32
  }
  func.func @transform_1(%arg0: i32) -> (i32, i32) {
    %c0_i32 = arith.constant 0 : i32
    %c0_i32_0 = arith.constant 0 : i32
    %c0_i32_1 = arith.constant 0 : i32
    return %c0_i32, %c0_i32_0 : i32, i32
  }
  func.func @transform_2(%arg0: i32) -> (i32, i32) {
    %c0_i32 = arith.constant 0 : i32
    %c0_i32_0 = arith.constant 0 : i32
    %c0_i32_1 = arith.constant 0 : i32
    return %c0_i32, %c0_i32_0 : i32, i32
  }
  func.func @transform_3(%arg0: i32) -> (i32, i32) {
    %c0_i32 = arith.constant 0 : i32
    %c0_i32_0 = arith.constant 0 : i32
    %c0_i32_1 = arith.constant 0 : i32
    return %c0_i32, %c0_i32_0 : i32, i32
  }
  func.func @transform_4(%arg0: i32) -> (i32, i32) {
    %c0_i32 = arith.constant 0 : i32
    %c0_i32_0 = arith.constant 0 : i32
    %c0_i32_1 = arith.constant 0 : i32
    return %c0_i32, %c0_i32_0 : i32, i32
  }
  func.func @transform_5(%arg0: i32) -> (i32, i32) {
    %c0_i32 = arith.constant 0 : i32
    %c0_i32_0 = arith.constant 0 : i32
    %c0_i32_1 = arith.constant 0 : i32
    return %c0_i32, %c0_i32_0 : i32, i32
  }
  func.func @transform_6(%arg0: i32) -> (i32, i32) {
    %c0_i32 = arith.constant 0 : i32
    %c0_i32_0 = arith.constant 0 : i32
    %c0_i32_1 = arith.constant 0 : i32
    return %c0_i32, %c0_i32_0 : i32, i32
  }
  func.func @transform_7(%arg0: i32) -> (i32, i32, i32) {
    %c0_i32 = arith.constant 0 : i32
    %c0_i32_0 = arith.constant 0 : i32
    %c0_i32_1 = arith.constant 0 : i32
    return %arg0, %c0_i32, %c0_i32_0 : i32, i32, i32
  }
}

</mosaic_0001>

<bundles_post_ra>
// kernel: tpu_custom_call.1
= control target key start
LH: loop header
LB: loop body
LE: loop exit
PB: predicated region body
PF: predicated region fallthrough
CT: control target
= control target key end

     0   :  { %12 = vsyncpa [#allocation4], 0  ;;  %s3473_s0 = inlined_call_operand.hbm [shape: f32[4,32,128], index: 0, kind: input, shape index: {}]   ;;  %s3474_s1 = inlined_call_operand.hbm [shape: f32[32,6], index: 1, kind: input, shape index: {}]   ;;  %s3475_s2 = inlined_call_operand.hbm [shape: f32[32,1], index: 2, kind: input, shape index: {}]   ;;  %s3476_s3 = inlined_call_operand.hbm [shape: f32[64,32], index: 3, kind: input, shape index: {}]   ;;  %s3477_s4 = inlined_call_operand.hbm [shape: f32[64,1], index: 4, kind: input, shape index: {}]   ;;  %s3478_s5 = inlined_call_operand.hbm [shape: f32[32,64], index: 5, kind: input, shape index: {}]   ;;  %s3479_s6 = inlined_call_operand.hbm [shape: f32[32,1], index: 6, kind: input, shape index: {}]   ;;  %s3480_s7 = inlined_call_operand.hbm [shape: f32[4,32,128], index: 7, kind: output, shape index: {}]  }
   0x1   :  { %14 = vsyncpa [#allocation4 + $0x1], 0 }
   0x2   :  { %15 = vsyncpa [#allocation7], 0 }
   0x3   :  { %16 = vsyncpa [#allocation10], 0 }
   0x4   :  { %17 = vsyncpa [#allocation13], 0 }
   0x5   :  { %18 = vsyncpa [#allocation5], 0 }
   0x6   :  { %20 = vsyncpa [#allocation5 + $0x1], 0  ;;  %s2510_s24 = smov 0   ;;  %s2512_s25 = smov 0  }
   0x7   :  { %s2514_s26 = smov 0   ;;  %s2516_s27 = smov 0  }
   0x8 LB: > { %s2445_s28 = smov [#allocation6]   ;;  %s2531_s30 = sadd.s32 4294967295, %s2443_s27   ;;  %s2443_s27 = sphi %s2516_s27, %s3508_s27   ;;  %s2439_s26 = sphi %s2514_s26, %s3507_s26   ;;  %s2435_s25 = sphi %s2512_s25, %s3506_s25   ;;  %s2431_s24 = sphi %s2510_s24, %s3505_s24  }
   0x9   : > { %s221_s29 = sshll.u32 %s2445_s28, 4  ;;  %p1788_p0 = scmp.ge.s32.totalorder %s2443_s27, 1  ;;  %s2536_s29 = int_to_ptr.vmem [resolvable:$true] %s221_s29 }
   0xa   : > { %p3481_p1 = scmp.eq.s32.totalorder %s2531_s30, 0  ;;  %p209_p2 = scmp.lt.s32.totalorder %s2443_s27, 3 }
   0xb   : > { %s2446_s9 = smov [#allocation9]   ;;  %s2447_s12 = smov [#allocation12]  }
   0xc   : > { %p2538_p3 = pnand %p1788_p0, %p209_p2  ;;  %s247_s10 = sshll.u32 %s2446_s9, 4  ;;  %s2551_s10 = int_to_ptr.vmem [resolvable:$true] %s247_s10 }
   0xd   : > { %s273_s13 = sshll.u32 %s2447_s12, 4  ;;  %s2167_s16 = scalar_lea.hbm %s3474_s1, 512  ;;  %s2553_s13 = int_to_ptr.vmem [resolvable:$true] %s273_s13 }
   0xe   : > { %s3485_s8 = scalar_select %p2538_p3, 1, 0 }
   0xf   : > { %p2055_p5 = pneg %p2538_p3  ;;  %p2168_p7 = scmp.ne.s32.totalorder %s3474_s1, %s2167_s16 }
  0x10   : > { %p2174_p11 = scmp.lt.u32.totalorder %s2167_s16, %s3474_s1 }
  0x11   : > { %p2547_p6 = pnand %p2055_p5, %p3481_p1 }
  0x13   : > { %p2563_p8 = pneg %p2547_p6 }
  0x15   : > { %p2170_p9 = pnand %p2563_p8, %p2168_p7 }
  0x17   : > { %p2171_p10 = pneg %p2170_p9 }
  0x19   : > { %p2176_p12 = pnand %p2174_p11, %p2171_p10 }
  0x1b   : > { %2179 = shalt.err (!%p2176_p12)
}
  0x1c   : > { %s2180_s22 = scalar_lea.vmem %s2536_s29, 512  ;;  %p2188_p5 = scmp.lt.s32.totalorder %s2536_s29, %s2536_s29 }
  0x1d   : > { %p2181_p13 = scmp.ne.s32.totalorder %s2536_s29, %s2180_s22  ;;  %p2189_p4 = scmp.lt.s32.totalorder %s2180_s22, %s2180_s22 }
  0x1f   : > { %p2183_p0 = pnand %p2181_p13, %p2563_p8  ;;  %p2190_p7 = por %p2189_p4, %p2188_p5 }
  0x21   : > { %p2184_p2 = pneg %p2183_p0 }
  0x23   : > { %p2191_p9 = pnand %p2190_p7, %p2184_p2 }
  0x25   : > { %2194 = shalt.err (!%p2191_p9)
}
  0x26   : > { %s3483_s23 = smov 128   ;;  %s2449_s28 = smov 8  }
  0x27   : > { %2058 = dma.hbm_to_vmem [thread:$0]  (!%p2547_p6), %s3474_s1, 512, %s2536_s29, [#allocation7], %s3483_s23, %s3483_s23, %s2449_s28  }
  0x28   : > { %s2195_s16 = scalar_lea.hbm %s3476_s3, 1024 }
  0x29   : > { %p2196_p4 = scmp.ne.s32.totalorder %s3476_s3, %s2195_s16  ;;  %p2202_p12 = scmp.lt.u32.totalorder %s2195_s16, %s3476_s3 }
  0x2b   : > { %p2198_p10 = pnand %p2196_p4, %p2563_p8 }
  0x2d   : > { %p2199_p11 = pneg %p2198_p10 }
  0x2f   : > { %p2204_p13 = pnand %p2202_p12, %p2199_p11 }
  0x31   : > { %2207 = shalt.err (!%p2204_p13)
}
  0x32   : > { %s2208_s29 = scalar_lea.vmem %s2551_s10, 1024  ;;  %p2216_p7 = scmp.lt.s32.totalorder %s2551_s10, %s2551_s10 }
  0x33   : > { %p2209_p0 = scmp.ne.s32.totalorder %s2551_s10, %s2208_s29  ;;  %p2217_p9 = scmp.lt.s32.totalorder %s2208_s29, %s2208_s29 }
  0x35   : > { %p2211_p2 = pnand %p2209_p0, %p2563_p8  ;;  %p2218_p4 = por %p2217_p9, %p2216_p7 }
  0x37   : > { %p2212_p5 = pneg %p2211_p2 }
  0x39   : > { %p2219_p10 = pnand %p2218_p4, %p2212_p5 }
  0x3b   : > { %2222 = shalt.err (!%p2219_p10)
}
  0x3c   : > { %2064 = dma.hbm_to_vmem [thread:$0]  (!%p2547_p6), %s3476_s3, 1024, %s2551_s10, [#allocation10], %s3483_s23, %s3483_s23, %s2449_s28  }
  0x3d   : > { %s2223_s15 = scalar_lea.hbm %s3478_s5, 512 }
  0x3e   : > { %p2224_p11 = scmp.ne.s32.totalorder %s3478_s5, %s2223_s15  ;;  %p2230_p0 = scmp.lt.u32.totalorder %s2223_s15, %s3478_s5 }
  0x40   : > { %p2226_p12 = pnand %p2224_p11, %p2563_p8 }
  0x42   : > { %p2227_p13 = pneg %p2226_p12 }
  0x44   : > { %p2232_p2 = pnand %p2230_p0, %p2227_p13 }
  0x46   : > { %2235 = shalt.err (!%p2232_p2)
}
  0x47   : > { %s2236_s10 = scalar_lea.vmem %s2553_s13, 512  ;;  %p2244_p4 = scmp.lt.s32.totalorder %s2553_s13, %s2553_s13 }
  0x48   : > { %p2237_p5 = scmp.ne.s32.totalorder %s2553_s13, %s2236_s10  ;;  %p2245_p10 = scmp.lt.s32.totalorder %s2236_s10, %s2236_s10 }
  0x4a   : > { %p2239_p7 = pnand %p2237_p5, %p2563_p8  ;;  %p2246_p11 = por %p2245_p10, %p2244_p4 }
  0x4c   : > { %p2240_p9 = pneg %p2239_p7 }
  0x4e   : > { %p2247_p12 = pnand %p2246_p11, %p2240_p9 }
  0x50   : > { %2250 = shalt.err (!%p2247_p12)
}
  0x51   : > { %2070 = dma.hbm_to_vmem [thread:$0]  (!%p2547_p6), %s3478_s5, 512, %s2553_s13, [#allocation13], %s3483_s23, %s3483_s23, %s2449_s28  }
  0x52   : > { %s2450_s22 = smov [#allocation8]   ;;  %s2451_s12 = smov [#allocation11]  }
  0x53   : > { %s234_s9 = sshll.u32 %s2450_s22, 4  ;;  %s260_s14 = sshll.u32 %s2451_s12, 4  ;;  %s235_s9 = int_to_ptr.vmem [resolvable:$true] %s234_s9  ;;  %s261_s14 = int_to_ptr.vmem [resolvable:$true] %s260_s14 }
  0x54   : > { %s2251_s17 = scalar_lea.hbm %s3475_s2, 512 }
  0x55   : > { %p2252_p13 = scmp.ne.s32.totalorder %s3475_s2, %s2251_s17  ;;  %p2258_p5 = scmp.lt.u32.totalorder %s2251_s17, %s3475_s2 }
  0x57   : > { %p2254_p0 = pnand %p2252_p13, %p2563_p8 }
  0x59   : > { %p2255_p2 = pneg %p2254_p0 }
  0x5b   : > { %p2260_p7 = pnand %p2258_p5, %p2255_p2 }
  0x5d   : > { %2263 = shalt.err (!%p2260_p7)
}
  0x5e   : > { %s2264_s13 = scalar_lea.vmem %s235_s9, 512  ;;  %p2272_p11 = scmp.lt.s32.totalorder %s235_s9, %s235_s9 }
  0x5f   : > { %p2265_p9 = scmp.ne.s32.totalorder %s235_s9, %s2264_s13  ;;  %p2273_p12 = scmp.lt.s32.totalorder %s2264_s13, %s2264_s13 }
  0x61   : > { %p2267_p4 = pnand %p2265_p9, %p2563_p8  ;;  %p2274_p1 = por %p2273_p12, %p2272_p11 }
  0x63   : > { %p2268_p10 = pneg %p2267_p4 }
  0x65   : > { %p2275_p3 = pnand %p2274_p1, %p2268_p10 }
  0x67   : > { %2278 = shalt.err (!%p2275_p3)
}
  0x68   : > { %2061 = dma.hbm_to_vmem [thread:$0]  (!%p2547_p6), %s3475_s2, 512, %s235_s9, [#allocation7], %s3483_s23, %s3483_s23, %s2449_s28  }
  0x69   : > { %s2279_s16 = scalar_lea.hbm %s3477_s4, 1024 }
  0x6a   : > { %p2280_p1 = scmp.ne.s32.totalorder %s3477_s4, %s2279_s16  ;;  %p2286_p0 = scmp.lt.u32.totalorder %s2279_s16, %s3477_s4 }
  0x6c   : > { %p2282_p3 = pnand %p2280_p1, %p2563_p8 }
  0x6e   : > { %p2283_p13 = pneg %p2282_p3 }
  0x70   : > { %p2288_p2 = pnand %p2286_p0, %p2283_p13 }
  0x72   : > { %2291 = shalt.err (!%p2288_p2)
}
  0x73   : > { %s2292_s21 = scalar_lea.vmem %s261_s14, 1024  ;;  %p2300_p4 = scmp.lt.s32.totalorder %s261_s14, %s261_s14 }
  0x74   : > { %p2293_p5 = scmp.ne.s32.totalorder %s261_s14, %s2292_s21  ;;  %p2301_p10 = scmp.lt.s32.totalorder %s2292_s21, %s2292_s21 }
  0x76   : > { %p2295_p7 = pnand %p2293_p5, %p2563_p8  ;;  %p2302_p11 = por %p2301_p10, %p2300_p4 }
  0x78   : > { %p2296_p9 = pneg %p2295_p7 }
  0x7a   : > { %p2303_p12 = pnand %p2302_p11, %p2296_p9 }
  0x7c   : > { %2306 = shalt.err (!%p2303_p12)
}
  0x7d   : > { %2067 = dma.hbm_to_vmem [thread:$0]  (!%p2547_p6), %s3477_s4, 1024, %s261_s14, [#allocation10], %s3483_s23, %s3483_s23, %s2449_s28  }
  0x7e   : > { %s2452_s29 = smov [#allocation14]   ;;  %s2307_s16 = scalar_lea.hbm %s3479_s6, 512 }
  0x7f   : > { %s286_s22 = sshll.u32 %s2452_s29, 4  ;;  %p2308_p1 = scmp.ne.s32.totalorder %s3479_s6, %s2307_s16  ;;  %s287_s22 = int_to_ptr.vmem [resolvable:$true] %s286_s22 }
  0x80   : > { %p2314_p0 = scmp.lt.u32.totalorder %s2307_s16, %s3479_s6 }
  0x81   : > { %p2310_p3 = pnand %p2308_p1, %p2563_p8 }
  0x83   : > { %p2311_p13 = pneg %p2310_p3 }
  0x85   : > { %p2316_p2 = pnand %p2314_p0, %p2311_p13 }
  0x87   : > { %2319 = shalt.err (!%p2316_p2)
}
  0x88   : > { %s2320_s14 = scalar_lea.vmem %s287_s22, 512  ;;  %p2328_p4 = scmp.lt.s32.totalorder %s287_s22, %s287_s22 }
  0x89   : > { %p2321_p5 = scmp.ne.s32.totalorder %s287_s22, %s2320_s14  ;;  %p2329_p10 = scmp.lt.s32.totalorder %s2320_s14, %s2320_s14 }
  0x8b   : > { %p2323_p7 = pnand %p2321_p5, %p2563_p8  ;;  %p2330_p11 = por %p2329_p10, %p2328_p4 }
  0x8d   : > { %p2324_p9 = pneg %p2323_p7 }
  0x8f   : > { %p2331_p12 = pnand %p2330_p11, %p2324_p9 }
  0x91   : > { %2334 = shalt.err (!%p2331_p12)
}
  0x92   : > { %2073 = dma.hbm_to_vmem [thread:$0]  (!%p2547_p6), %s3479_s6, 512, %s287_s22, [#allocation13], %s3483_s23, %s3483_s23, %s2449_s28  }
  0x93   : > { %s1787_s11 = sadd.s32 4294967294, %s2443_s27   ;;  %s2704_s19 = sadd.s32 1, %s2443_s27  }
  0x94   : > { %s30_s13 = ssub.s32 %s2443_s27, %s2704_s19  ;;  %s33_s29 = sadd.s32 1, %s2439_s26 }
  0x95   : > { %p31_p8 = scmp.eq.s32.totalorder %s30_s13, 0  ;;  %p40_p1 = scmp.ne.s32.totalorder %s2439_s26, %s2435_s25 }
  0x96   : > { %p41_p3 = scmp.eq.s32.totalorder %s2443_s27, 0  ;;  %p46_p13 = scmp.ne.s32.totalorder %s2435_s25, %s2431_s24 }
  0x97   : > { %s2715_s12 = scalar_select %p31_p8, %s2439_s26, %s33_s29  }
  0x98   : > { %p2717_p0 = por %p41_p3, %p40_p1  ;;  %p3489_p2 = scmp.eq.s32.totalorder %s2531_s30, 0 }
  0x99   : > { %p196_p5 = scmp.eq.s32.totalorder %s2531_s30, 1  ;;  %p202_p7 = scmp.eq.s32.totalorder %s1787_s11, 1 }
  0x9a   : > { %p2723_p6 = por %p3489_p2, %p46_p13  ;;  %p2088_p9 = scmp.lt.s32.totalorder %s2443_s27, 2 }
  0x9b   : > { %s300_s16 = sand.u32 1, %s2439_s26   ;;  %p2730_p4 = por %p196_p5, %p40_p1 }
  0x9c   : > { %p2734_p10 = por %p202_p7, %p46_p13  ;;  %s1796_s20 = sshll.u32 %s300_s16, 6 }
  0x9d   : > { %s3491_s17 = scalar_select %p2730_p4, 1, 0 }
  0x9e   : > { %s3492_s18 = scalar_select %p2734_p10, 1, 0 }
  0x9f   : > { %s1844_s10 = sshll.u32 %s2443_s27, 10  ;;  %s304_s11 = scalar_lea.vmem [#allocation3], %s1796_s20 }
  0xa0   : > { %s2742_s9 = scalar_lea.hbm %s3473_s0, %s1844_s10  ;;  %s312_s13 = sshll.u32 %s304_s11, 4  ;;  %s2744_s13 = int_to_ptr.vmem [resolvable:$true] %s312_s13 }
  0xa1   : > { %p2748_p11 = pnand %p2088_p9, %p2717_p0  ;;  %s2752_s23 = scalar_lea.sflag [#allocation4], %s300_s16 }
  0xa2   : > { %s2335_s14 = scalar_lea.hbm %s2742_s9, 1024  ;;  %s2340_s15 = scalar_lea.hbm %s3473_s0, 2048 }
  0xa3   : > { %p2336_p12 = scmp.ne.s32.totalorder %s2742_s9, %s2335_s14  ;;  %p2337_p8 = pneg %p2748_p11 }
  0xa4   : > { %p2341_p13 = scmp.lt.u32.totalorder %s2742_s9, %s3473_s0  ;;  %p2342_p0 = scmp.lt.u32.totalorder %s2340_s15, %s2335_s14 }
  0xa5   : > { %p2338_p1 = pnand %p2337_p8, %p2336_p12  ;;  %p2344_p5 = scmp.lt.u32.totalorder %s2335_s14, %s2742_s9 }
  0xa6   : > { %p2343_p2 = por %p2342_p0, %p2341_p13 }
  0xa7   : > { %p2339_p3 = pneg %p2338_p1 }
  0xa8   : > { %p2345_p7 = por %p2344_p5, %p2343_p2 }
  0xaa   : > { %p2346_p9 = pnand %p2345_p7, %p2339_p3 }
  0xac   : > { %2349 = shalt.err (!%p2346_p9)
}
  0xad   : > { %s2350_s16 = scalar_lea.vmem %s2744_s13, 1024  ;;  %s2453_s20 = smov [#allocation3]  }
  0xae   : > { %p2351_p12 = scmp.ne.s32.totalorder %s2744_s13, %s2350_s16  ;;  %s2355_s10 = sshll.u32 %s2453_s20, 4  ;;  %s2356_s10 = int_to_ptr.vmem [resolvable:$false] %s2355_s10 }
  0xaf   : > { %s2357_s21 = scalar_lea.vmem %s2356_s10, 2048  ;;  %p2358_p4 = scmp.lt.s32.totalorder %s2744_s13, %s2356_s10 }
  0xb0   : > { %p2353_p1 = pnand %p2351_p12, %p2337_p8  ;;  %p2359_p13 = scmp.lt.s32.totalorder %s2357_s21, %s2350_s16 }
  0xb2   : > { %p2354_p10 = pneg %p2353_p1  ;;  %p2360_p0 = por %p2359_p13, %p2358_p4 }
  0xb4   : > { %p2361_p2 = pnand %p2360_p0, %p2354_p10 }
  0xb6   : > { %2364 = shalt.err (!%p2361_p2)
}
  0xb7   : > { %s3494_s14 = smov 128   ;;  %p3495_p8 = scmp.ne.s32.totalorder %s3485_s8, 0 }
  0xb8   : > { %2077 = dma.hbm_to_vmem [thread:$0]  (!%p2748_p11), %s2742_s9, 1024, %s2744_s13, %s2752_s23, %s3494_s14, %s3494_s14, %s2449_s28  }
  0xb9   : > { %324 = sbr.rel (%p3495_p8) target bundleno = 1121 (0x461), region = 48  ;;  %s2786_s15 = sand.u32 (!%p3495_p8), 1, %s2435_s25  }
  0xba   : > { %s1801_s11 = sshll.u32 (!%p3495_p8), %s2786_s15, 6  ;;  %s327_s16 = scalar_lea.sflag (!%p3495_p8), [#allocation4], %s2786_s15 }
  0xbb   : > { %s2792_s29 = scalar_lea.vmem (!%p3495_p8), [#allocation3], %s1801_s11 }
  0xc0   : > { %2410 = dma.done.wait (%p2723_p6), %s327_s16, 1024  }
  0xc1   : > { %2412 = vsyncadd (%p2723_p6), %s327_s16, 4294966272  ;;  %p3496_p4 = scmp.eq.s32.totalorder %s2531_s30, 0 }
  0xc3   : > { %2414 = dma.done.wait (%p3496_p4), [#allocation7], 1024   ;;  %p3497_p10 = pmov %p3496_p4 }
  0xc4   : > { %p3498_p11 = pmov %p3496_p4 }
  0xc5   : > { %2416 = vsyncadd (%p3497_p10), [#allocation7], 4294966272 }
  0xc6   : > { %2418 = dma.done.wait (%p3498_p11), [#allocation10], 2048   ;;  %p3499_p3 = pmov %p3496_p4 }
  0xc8   : > { %2420 = vsyncadd (%p3499_p3), [#allocation10], 4294965248  ;;  %p3500_p5 = pmov %p3499_p3 }
  0xc9   : > { %p3501_p7 = pmov %p3499_p3 }
  0xca   : > { %2422 = dma.done.wait (%p3500_p5), [#allocation13], 1024  }
  0xcb   : > { %2424 = vsyncadd (%p3501_p7), [#allocation13], 4294966272  ;;  %v2454_v0 = vmov 1   ;;  %vm387_vm0 = vcmask 48128   ;;  %vm396_vm1 = vcmask 80944   ;;  %v2455_v1 = vmov 0.0  }
  0xcc   : > { %2151 = vset.pattern.permute.xlu1 %v2454_v0  ;;  %2154 = vset.pattern.permute.xlu0 %v2454_v0  ;;  %388 = vst.msk [vmem:[#allocation2] sm:$0xff] %vm387_vm0, %v2455_v1  ;;  %389 = vst.msk [vmem:[#allocation2 + $0x10] sm:$0xff] %vm387_vm0, %v2455_v1  ;;  %v462_v2 = vld [vmem:[#allocation6] sm:$0xff]  ;;  %s2456_s8 = smov 6   ;;  %v463_v4 = vld [vmem:[#allocation6 + $0x8] sm:$0xff]  ;;  %v2457_v7 = vmov 2  }
  0xcd   : > { %397 = vst.msk [vmem:[#allocation2 + $0x8] sm:$0xff] %vm396_vm1, %v2455_v1  ;;  %398 = vst.msk [vmem:[#allocation2 + $0x18] sm:$0xff] %vm396_vm1, %v2455_v1  ;;  %v2827_v3 = vld [vmem:[%s2792_s29] sm:$0xff]  ;;  %523 = vperm.xlu1 %2151, %v462_v2   ;;  %v2832_v5 = vld [vmem:[%s2792_s29 + $0x8] sm:$0xff]  ;;  %v2458_v11 = vmov 3   ;;  %v2459_v12 = vmov 5  }
  0xce   : > { %390 = vst.msk [vmem:[#allocation2 + $0x20] sm:$0xff] %vm387_vm0, %v2455_v1  ;;  %391 = vst.msk [vmem:[#allocation2 + $0x30] sm:$0xff] %vm387_vm0, %v2455_v1  ;;  %421 = vrot.lane.b32.xlu0 %v2827_v3, %s2456_s8  ;;  %v2837_v6 = vld [vmem:[%s2792_s29 + $0x18] sm:$0xff]  ;;  %v2842_v9 = vld [vmem:[%s2792_s29 + $0x10] sm:$0xff]  ;;  %v2460_v13 = vmov 4   ;;  %v2461_v16 = vmov 0  }
  0xcf   : > { %392 = vst.msk [vmem:[#allocation2 + $0x40] sm:$0xff] %vm387_vm0, %v2455_v1  ;;  %393 = vst.msk [vmem:[#allocation2 + $0x50] sm:$0xff] %vm387_vm0, %v2455_v1  ;;  %v465_v8 = vld [vmem:[#allocation6 + $0x18] sm:$0xff]  ;;  %v464_v10 = vld [vmem:[#allocation6 + $0x10] sm:$0xff]  ;;  %vm445_vm2 = vcmask 1047600   ;;  %s2462_s23 = smov 126  }
  0xd0   : > { %394 = vst.msk [vmem:[#allocation2 + $0x60] sm:$0xff] %vm387_vm0, %v2455_v1  ;;  %395 = vst.msk [vmem:[#allocation2 + $0x70] sm:$0xff] %vm387_vm0, %v2455_v1  ;;  %v409_v14 = vld [vmem:[%s2792_s29 + $0x20] sm:$0xff]  ;;  %v411_v15 = vld [vmem:[%s2792_s29 + $0x30] sm:$0xff]  ;;  %s2463_s28 = smov 124   ;;  %s2464_s22 = smov 122  }
  0xd1   : > { %399 = vst.msk [vmem:[#allocation2 + $0x28] sm:$0xff] %vm396_vm1, %v2455_v1  ;;  %400 = vst.msk [vmem:[#allocation2 + $0x38] sm:$0xff] %vm396_vm1, %v2455_v1  ;;  %527 = vperm.xlu1 %2151, %v463_v4   ;;  %v467_v17 = vld [vmem:[#allocation8 + $0x8] sm:$0xff]  ;;  %v412_v19 = vld [vmem:[%s2792_s29 + $0x38] sm:$0xff]  ;;  %s2465_s9 = smov 120   ;;  %s2466_s13 = smov 118  }
  0xd2   : > { %401 = vst.msk [vmem:[#allocation2 + $0x48] sm:$0xff] %vm396_vm1, %v2455_v1  ;;  %402 = vst.msk [vmem:[#allocation2 + $0x58] sm:$0xff] %vm396_vm1, %v2455_v1  ;;  %423 = vrot.lane.b32.xlu0 %v2832_v5, %s2456_s8  ;;  %v410_v18 = vld [vmem:[%s2792_s29 + $0x28] sm:$0xff]  ;;  %v466_v20 = vld [vmem:[#allocation8] sm:$0xff]  ;;  %vm1163_vm3 = vcmask 261120   ;;  %vm602_vm4 = vcmask 1031168  }
  0xd3   : > { %403 = vst.msk [vmem:[#allocation2 + $0x68] sm:$0xff] %vm396_vm1, %v2455_v1  ;;  %404 = vst.msk [vmem:[#allocation2 + $0x78] sm:$0xff] %vm396_vm1, %v2455_v1  ;;  %vm707_vm5 = vcmask 1014784   ;;  %vm812_vm6 = vcmask 998400   ;;  %vm917_vm7 = vcmask 982016   ;;  %vm1022_vm8 = vcmask 965632  }
  0xd4   : > { %vm1321_vm9 = vcmask 523264   ;;  %s3406_s20 = scalar_lea.vmem [#allocation15], %s1801_s11  ;;  %s1846_s21 = sshll.u32 %s2531_s30, 10 }
  0xd5   : > { %2152 = vset.pattern.permute.xlu1 %v2457_v7  ;;  %s1657_s10 = sshll.u32 %s3406_s20, 4  ;;  %s3426_s16 = scalar_lea.hbm %s3480_s7, %s1846_s21  ;;  %s3419_s10 = int_to_ptr.vmem [resolvable:$true] %s1657_s10 }
  0xd6   : > { %427 = vrot.lane.b32.xlu0 %v2837_v6, %s2456_s8  ;;  %632 = vperm.xlu1 %2152, %v463_v4   ;;  %s1643_s30 = scalar_lea.sflag [#allocation5], %s2786_s15  ;;  %p3502_p9 = scmp.ne.s32.totalorder %s3491_s17, 0 }
  0xda   : > { %535 = vperm.xlu0 %2154, %v465_v8   ;;  %425 = vrot.lane.b32.xlu1 %v2842_v9, %s2456_s8 }
  0xdb   : > { %2153 = vset.pattern.permute.xlu1 %v2454_v0 }
  0xde   : > { %2155 = vset.pattern.permute.xlu0 %v2457_v7  ;;  %531 = vperm.xlu1 %2153, %v464_v10  }
  0xdf   : > { %628 = vperm.xlu0 %2155, %v462_v2  }
  0xe2   : > { %2156 = vset.pattern.permute.xlu1 %v2458_v11 }
  0xe3   : > { %636 = vperm.xlu0 %2155, %v464_v10   ;;  %733 = vperm.xlu1 %2156, %v462_v2  }
  0xe7   : > { %2160 = vset.pattern.permute.xlu0 %v2459_v12  ;;  %737 = vperm.xlu1 %2156, %v463_v4  }
  0xe8   : > { %943 = vperm.xlu0 %2160, %v462_v2  }
  0xeb   : > { %2157 = vset.pattern.permute.xlu1 %v2457_v7 }
  0xec   : > { %2161 = vset.pattern.permute.xlu0 %v2460_v13  ;;  %640 = vperm.xlu1 %2157, %v465_v8  }
  0xed   : > { %842 = vperm.xlu0 %2161, %v463_v4  }
  0xf0   : > { %2158 = vset.pattern.permute.xlu1 %v2460_v13 }
  0xf1   : > { %850 = vperm.xlu0 %2161, %v465_v8   ;;  %838 = vperm.xlu1 %2158, %v462_v2  }
  0xf5   : > { %429 = vrot.lane.b32.xlu0 %v409_v14, %s2456_s8  ;;  %2159 = vset.pattern.permute.xlu1 %v2458_v11 }
  0xf6   : > { %2165 = vset.pattern.permute.xlu0 %v2461_v16  ;;  %741 = vperm.xlu1 %2159, %v464_v10  }
  0xf9   : > { %433 = vrot.lane.b32.xlu0 %v411_v15, %s2456_s8 }
  0xfa   : > { %745 = vperm.xlu1 %2159, %v465_v8  }
  0xfd   : > { %480 = vperm.xlu0 %2165, %v462_v2  }
  0xfe   : > { %2162 = vset.pattern.permute.xlu1 %v2459_v12 }
  0xff   : > { %947 = vperm.xlu1 %2162, %v463_v4  }
 0x101   : > { %495 = vperm.xlu0 %2165, %v465_v8  }
 0x103   : > { %2163 = vset.pattern.permute.xlu1 %v2460_v13 }
 0x104   : > { %846 = vperm.xlu1 %2163, %v464_v10  }
 0x105   : > { %1062 = vperm.xlu0 %2165, %v467_v17  }
 0x108   : > { %2164 = vset.pattern.permute.xlu1 %v2459_v12 }
 0x109   : > { %951 = vperm.xlu1 %2164, %v464_v10  }
 0x10d   : > { %955 = vperm.xlu1 %2164, %v465_v8  }
 0x111   : > { %431 = vrot.lane.b32.xlu1 %v410_v18, %s2456_s8 }
 0x112   : > { %2166 = vset.pattern.permute.xlu1 %v2461_v16 }
 0x115   : > { %435 = vrot.lane.b32.xlu1 %v412_v19, %s2456_s8  ;;  %s2467_s8 = smov [#allocation15]  }
 0x119   : > { %485 = vperm.xlu1 %2166, %v463_v4  }
 0x11d   : > { %490 = vperm.xlu1 %2166, %v464_v10  }
 0x121   : > { %1057 = vperm.xlu1 %2166, %v466_v20  }
 0x140   : > { %v422_v21 = vpop.permute.xlu0 %421 }
 0x141   : > { %446 = vst.msk [vmem:[#allocation2] sm:$0xff] %vm445_vm2, %v422_v21 }
 0x142   : > { %447 = vst.msk [vmem:[#allocation2 + $0x8] sm:$0xff] %vm387_vm0, %v422_v21 }
 0x144   : > { %v424_v22 = vpop.permute.xlu0 %423 }
 0x145   : > { %448 = vst.msk [vmem:[#allocation2 + $0x10] sm:$0xff] %vm445_vm2, %v424_v22 }
 0x146   : > { %449 = vst.msk [vmem:[#allocation2 + $0x18] sm:$0xff] %vm387_vm0, %v424_v22 }
 0x148   : > { %v428_v23 = vpop.permute.xlu0 %427  ;;  %v2864_v26 = vld [vmem:[#allocation2] sm:$0xff] }
 0x149   : > { %452 = vst.msk [vmem:[#allocation2 + $0x30] sm:$0xff] %vm445_vm2, %v428_v23  ;;  %v2862_v25 = vld [vmem:[#allocation2 + $0x8] sm:$0xff] }
 0x14a   : > { %453 = vst.msk [vmem:[#allocation2 + $0x38] sm:$0xff] %vm387_vm0, %v428_v23 }
 0x14c   : > { %v2860_v24 = vpop.permute.xlu1 %523  ;;  %v2876_v31 = vld [vmem:[#allocation2 + $0x10] sm:$0xff] }
 0x14d   : > { %v539_v27 = vmul.f32 %v2860_v24, %v2862_v25  ;;  %v538_v28 = vmul.f32 %v2860_v24, %v2864_v26  ;;  %v2874_v30 = vld [vmem:[#allocation2 + $0x18] sm:$0xff] }
 0x14f   : > { %572 = vrot.lane.b32.xlu0 %v539_v27, %s2462_s23  ;;  %570 = vrot.lane.b32.xlu1 %v538_v28, %s2462_s23 }
 0x150   : > { %v2872_v29 = vpop.permute.xlu1 %527  ;;  %v2926_v52 = vld [vmem:[#allocation2 + $0x30] sm:$0xff] }
 0x151   : > { %v541_v32 = vmul.f32 %v2872_v29, %v2874_v30  ;;  %v540_v33 = vmul.f32 %v2872_v29, %v2876_v31  ;;  %v2924_v51 = vld [vmem:[#allocation2 + $0x38] sm:$0xff] }
 0x153   : > { %576 = vrot.lane.b32.xlu0 %v541_v32, %s2462_s23  ;;  %574 = vrot.lane.b32.xlu1 %v540_v33, %s2462_s23 }
 0x155   : > { %v2884_v34 = vpop.permute.xlu1 %632 }
 0x156   : > { %v646_v43 = vmul.f32 %v2884_v34, %v2874_v30  ;;  %v645_v44 = vmul.f32 %v2884_v34, %v2876_v31 }
 0x159   : > { %v2886_v35 = vpop.permute.xlu0 %535  ;;  %v426_v36 = vpop.permute.xlu1 %425 }
 0x15a   : > { %450 = vst.msk [vmem:[#allocation2 + $0x20] sm:$0xff] %vm445_vm2, %v426_v36  ;;  %v545_v53 = vmul.f32 %v2886_v35, %v2924_v51  ;;  %v544_v54 = vmul.f32 %v2886_v35, %v2926_v52 }
 0x15b   : > { %451 = vst.msk [vmem:[#allocation2 + $0x28] sm:$0xff] %vm387_vm0, %v426_v36 }
 0x15d   : > { %v2892_v38 = vpop.permute.xlu1 %531 }
 0x15e   : > { %v2890_v37 = vpop.permute.xlu0 %628 }
 0x15f   : > { %v644_v39 = vmul.f32 %v2890_v37, %v2862_v25  ;;  %v643_v40 = vmul.f32 %v2890_v37, %v2864_v26 }
 0x161   : > { %677 = vrot.lane.b32.xlu0 %v644_v39, %s2463_s28  ;;  %675 = vrot.lane.b32.xlu1 %v643_v40, %s2463_s28  ;;  %v2910_v46 = vld [vmem:[#allocation2 + $0x20] sm:$0xff] }
 0x162   : > { %v2900_v41 = vpop.permute.xlu0 %636  ;;  %v2902_v42 = vpop.permute.xlu1 %733  ;;  %v2908_v45 = vld [vmem:[#allocation2 + $0x28] sm:$0xff]  ;;  %v542_v50 = vmul.f32 %v2892_v38, %v2910_v46 }
 0x163   : > { %v543_v49 = vmul.f32 %v2892_v38, %v2908_v45  ;;  %v749_v57 = vmul.f32 %v2902_v42, %v2862_v25  ;;  %v748_v58 = vmul.f32 %v2902_v42, %v2864_v26  ;;  %v648_v1 = vmul.f32 %v2900_v41, %v2908_v45 }
 0x164   : > { %v647_v2 = vmul.f32 %v2900_v41, %v2910_v46 }
 0x165   : > { %681 = vrot.lane.b32.xlu0 %v646_v43, %s2463_s28  ;;  %679 = vrot.lane.b32.xlu1 %v645_v44, %s2463_s28  ;;  %v469_v43 = vld [vmem:[#allocation8 + $0x18] sm:$0xff]  ;;  %v468_v44 = vld [vmem:[#allocation8 + $0x10] sm:$0xff] }
 0x166   : > { %v2914_v47 = vpop.permute.xlu1 %737 }
 0x167   : > { %v2916_v48 = vpop.permute.xlu0 %943  ;;  %v751_v61 = vmul.f32 %v2914_v47, %v2874_v30  ;;  %v750_v62 = vmul.f32 %v2914_v47, %v2876_v31 }
 0x168   : > { %v959_v32 = vmul.f32 %v2916_v48, %v2862_v25  ;;  %v958_v33 = vmul.f32 %v2916_v48, %v2864_v26 }
 0x169   : > { %580 = vrot.lane.b32.xlu0 %v543_v49, %s2462_s23  ;;  %578 = vrot.lane.b32.xlu1 %v542_v50, %s2462_s23 }
 0x16b   : > { %v2932_v55 = vpop.permute.xlu1 %640 }
 0x16c   : > { %v2934_v56 = vpop.permute.xlu0 %842  ;;  %v650_v8 = vmul.f32 %v2932_v55, %v2924_v51  ;;  %v649_v10 = vmul.f32 %v2932_v55, %v2926_v52 }
 0x16d   : > { %584 = vrot.lane.b32.xlu0 %v545_v53, %s2462_s23  ;;  %582 = vrot.lane.b32.xlu1 %v544_v54, %s2462_s23  ;;  %v856_v17 = vmul.f32 %v2934_v56, %v2874_v30  ;;  %v855_v18 = vmul.f32 %v2934_v56, %v2876_v31 }
 0x170   : > { %v2942_v59 = vpop.permute.xlu0 %850  ;;  %v2944_v60 = vpop.permute.xlu1 %838 }
 0x171   : > { %782 = vrot.lane.b32.xlu0 %v749_v57, %s2464_s22  ;;  %780 = vrot.lane.b32.xlu1 %v748_v58, %s2464_s22  ;;  %v854_v13 = vmul.f32 %v2944_v60, %v2862_v25  ;;  %v853_v14 = vmul.f32 %v2944_v60, %v2864_v26 }
 0x174   : > { %v430_v63 = vpop.permute.xlu0 %429 }
 0x175   : > { %454 = vst.msk [vmem:[#allocation2 + $0x40] sm:$0xff] %vm445_vm2, %v430_v63  ;;  %786 = vrot.lane.b32.xlu0 %v751_v61, %s2464_s22  ;;  %784 = vrot.lane.b32.xlu1 %v750_v62, %s2464_s22  ;;  %v2956_v0 = vpop.permute.xlu1 %741  ;;  %v860_v61 = vmul.f32 %v2942_v59, %v2924_v51  ;;  %v859_v62 = vmul.f32 %v2942_v59, %v2926_v52 }
 0x176   : > { %455 = vst.msk [vmem:[#allocation2 + $0x48] sm:$0xff] %vm387_vm0, %v430_v63  ;;  %v753_v20 = vmul.f32 %v2956_v0, %v2908_v45  ;;  %v752_v21 = vmul.f32 %v2956_v0, %v2910_v46 }
 0x178   : > { %v434_v4 = vpop.permute.xlu0 %433 }
 0x179   : > { %458 = vst.msk [vmem:[#allocation2 + $0x60] sm:$0xff] %vm445_vm2, %v434_v4  ;;  %685 = vrot.lane.b32.xlu0 %v648_v1, %s2463_s28  ;;  %683 = vrot.lane.b32.xlu1 %v647_v2, %s2463_s28  ;;  %v2966_v7 = vpop.permute.xlu1 %745 }
 0x17a   : > { %459 = vst.msk [vmem:[#allocation2 + $0x68] sm:$0xff] %vm387_vm0, %v434_v4  ;;  %v755_v23 = vmul.f32 %v2966_v7, %v2924_v51  ;;  %v754_v27 = vmul.f32 %v2966_v7, %v2926_v52 }
 0x17c   : > { %v2972_v11 = vpop.permute.xlu0 %480 }
 0x17d   : > { %689 = vrot.lane.b32.xlu0 %v650_v8, %s2463_s28  ;;  %687 = vrot.lane.b32.xlu1 %v649_v10, %s2463_s28 }
 0x17e   : > { %v2976_v12 = vpop.permute.xlu1 %947 }
 0x17f   : > { %v961_v39 = vmul.f32 %v2976_v12, %v2874_v30  ;;  %v960_v40 = vmul.f32 %v2976_v12, %v2876_v31 }
 0x180   : > { %v496_v15 = vpop.permute.xlu0 %495  ;;  %v3033_v54 = vld [vmem:[#allocation2 + $0x60] sm:$0xff] }
 0x181   : > { %v2983_v16 = vmul.f32 %v2926_v52, %v496_v15  ;;  %887 = vrot.lane.b32.xlu0 %v854_v13, %s2465_s9  ;;  %885 = vrot.lane.b32.xlu1 %v853_v14, %s2465_s9  ;;  %v3064_v13 = vld [vmem:[#allocation2 + $0x40] sm:$0xff]  ;;  %v3066_v14 = vld [vmem:[#allocation2 + $0x48] sm:$0xff] }
 0x183   : > { %v2991_v19 = vpop.permute.xlu1 %846 }
 0x184   : > { %v858_v30 = vmul.f32 %v2991_v19, %v2908_v45  ;;  %v857_v50 = vmul.f32 %v2991_v19, %v2910_v46 }
 0x185   : > { %891 = vrot.lane.b32.xlu0 %v856_v17, %s2465_s9  ;;  %889 = vrot.lane.b32.xlu1 %v855_v18, %s2465_s9  ;;  %v651_v18 = vmul.f32 %v2890_v37, %v3064_v13 }
 0x188   : > { %v2999_v22 = vpop.permute.xlu1 %951 }
 0x189   : > { %790 = vrot.lane.b32.xlu0 %v753_v20, %s2464_s22  ;;  %788 = vrot.lane.b32.xlu1 %v752_v21, %s2464_s22  ;;  %v963_v2 = vmul.f32 %v2999_v22, %v2908_v45  ;;  %v962_v4 = vmul.f32 %v2999_v22, %v2910_v46  ;;  %v547_v45 = vmul.f32 %v2860_v24, %v3066_v14  ;;  %v3092_v20 = vld [vmem:[#allocation9] sm:$0xff] }
 0x18a   : > { %1903 = vmatprep.mubr.msk.f32.mxu0 %vm1163_vm3, %v3092_v20 }
 0x18c   : > { %v3007_v28 = vpop.permute.xlu1 %955 }
 0x18d   : > { %794 = vrot.lane.b32.xlu0 %v755_v23, %s2464_s22  ;;  %792 = vrot.lane.b32.xlu1 %v754_v27, %s2464_s22  ;;  %v965_v8 = vmul.f32 %v3007_v28, %v2924_v51  ;;  %v964_v10 = vmul.f32 %v3007_v28, %v2926_v52  ;;  %v3100_v23 = vld [vmem:[#allocation2 + $0x68] sm:$0xff]  ;;  %v550_v27 = vmul.f32 %v2892_v38, %v3033_v54 }
 0x190   : > { %v432_v36 = vpop.permute.xlu1 %431 }
 0x191   : > { %992 = vrot.lane.b32.xlu0 %v959_v32, %s2466_s13  ;;  %990 = vrot.lane.b32.xlu1 %v958_v33, %s2466_s13  ;;  %456 = vst.msk [vmem:[#allocation2 + $0x50] sm:$0xff] %vm445_vm2, %v432_v36 }
 0x192   : > { %457 = vst.msk [vmem:[#allocation2 + $0x58] sm:$0xff] %vm387_vm0, %v432_v36 }
 0x194   : > { %v436_v25 = vpop.permute.xlu1 %435 }
 0x195   : > { %996 = vrot.lane.b32.xlu0 %v961_v39, %s2466_s13  ;;  %994 = vrot.lane.b32.xlu1 %v960_v40, %s2466_s13  ;;  %460 = vst.msk [vmem:[#allocation2 + $0x70] sm:$0xff] %vm445_vm2, %v436_v25  ;;  %v3120_v39 = vpop.permute.xlu0 %1062  ;;  %v756_v40 = vmul.f32 %v2902_v42, %v3064_v13 }
 0x196   : > { %461 = vst.msk [vmem:[#allocation2 + $0x78] sm:$0xff] %vm387_vm0, %v436_v25 }
 0x198   : > { %v3027_v49 = vpop.permute.xlu1 %485 }
 0x199   : > { %1072 = vperm.xlu0 %2165, %v469_v43   ;;  %1067 = vperm.xlu1 %2166, %v468_v44   ;;  %v3076_v51 = vld [vmem:[#allocation2 + $0x58] sm:$0xff] }
 0x19a   : > { %v549_v52 = vmul.f32 %v2872_v29, %v3076_v51 }
 0x19c   : > { %v491_v53 = vpop.permute.xlu1 %490  ;;  %v3047_v63 = vld [vmem:[#allocation2 + $0x70] sm:$0xff] }
 0x19d   : > { %895 = vrot.lane.b32.xlu0 %v858_v30, %s2465_s9  ;;  %893 = vrot.lane.b32.xlu1 %v857_v50, %s2465_s9  ;;  %v3038_v57 = vmul.f32 %v2910_v46, %v491_v53  ;;  %v3041_v58 = vmul.f32 %v491_v53, %v3033_v54  ;;  %v3052_v1 = vmul.f32 %v3047_v63, %v496_v15  ;;  %v3074_v15 = vld [vmem:[#allocation2 + $0x50] sm:$0xff]  ;;  %v3108_v32 = vld [vmem:[#allocation2 + $0x78] sm:$0xff] }
 0x19e   : > { %v546_v46 = vmul.f32 %v2860_v24, %v3064_v13  ;;  %v548_v17 = vmul.f32 %v2872_v29, %v3074_v15  ;;  %v652_v24 = vmul.f32 %v2890_v37, %v3066_v14  ;;  %v654_v29 = vmul.f32 %v2884_v34, %v3076_v51 }
 0x19f   : > { %v653_v21 = vmul.f32 %v2884_v34, %v3074_v15  ;;  %v551_v37 = vmul.f32 %v2892_v38, %v3100_v23  ;;  %v553_v34 = vmul.f32 %v2886_v35, %v3108_v32  ;;  %v552_v33 = vmul.f32 %v2886_v35, %v3047_v63 }
 0x1a0   : > { %v3118_v36 = vpop.permute.xlu1 %1057  ;;  %v757_v38 = vmul.f32 %v2902_v42, %v3066_v14  ;;  %v759_v35 = vmul.f32 %v2914_v47, %v3076_v51  ;;  %v758_v25 = vmul.f32 %v2914_v47, %v3074_v15  ;;  %v656_v42 = vmul.f32 %v2900_v41, %v3100_v23 }
 0x1a1   : > { %899 = vrot.lane.b32.xlu0 %v860_v61, %s2465_s9  ;;  %897 = vrot.lane.b32.xlu1 %v859_v62, %s2465_s9  ;;  %v655_v30 = vmul.f32 %v2900_v41, %v3033_v54  ;;  %v658_v53 = vmul.f32 %v2932_v55, %v3108_v32  ;;  %v657_v61 = vmul.f32 %v2932_v55, %v3047_v63 }
 0x1a5   : > { %1000 = vrot.lane.b32.xlu0 %v963_v2, %s2466_s13  ;;  %998 = vrot.lane.b32.xlu1 %v962_v4, %s2466_s13  ;;  %v862_v2 = vmul.f32 %v2944_v60, %v3066_v14  ;;  %v861_v4 = vmul.f32 %v2944_v60, %v3064_v13 }
 0x1a9   : > { %1004 = vrot.lane.b32.xlu0 %v965_v8, %s2466_s13  ;;  %1002 = vrot.lane.b32.xlu1 %v964_v10, %s2466_s13  ;;  %v864_v10 = vmul.f32 %v2934_v56, %v3076_v51 }
 0x1ad   : > { %588 = vrot.lane.b32.xlu0 %v547_v45, %s2462_s23  ;;  %586 = vrot.lane.b32.xlu1 %v546_v46, %s2462_s23  ;;  %v863_v45 = vmul.f32 %v2934_v56, %v3074_v15 }
 0x1b1   : > { %592 = vrot.lane.b32.xlu0 %v549_v52, %s2462_s23  ;;  %590 = vrot.lane.b32.xlu1 %v548_v17, %s2462_s23  ;;  %v761_v52 = vmul.f32 %v2956_v0, %v3100_v23  ;;  %v760_v17 = vmul.f32 %v2956_v0, %v3033_v54 }
 0x1b5   : > { %693 = vrot.lane.b32.xlu0 %v652_v24, %s2463_s28  ;;  %691 = vrot.lane.b32.xlu1 %v651_v18, %s2463_s28 }
 0x1b9   : > { %697 = vrot.lane.b32.xlu0 %v654_v29, %s2463_s28  ;;  %695 = vrot.lane.b32.xlu1 %v653_v21, %s2463_s28  ;;  %v763_v21 = vmul.f32 %v2966_v7, %v3108_v32 }
 0x1bd   : > { %596 = vrot.lane.b32.xlu0 %v551_v37, %s2462_s23  ;;  %594 = vrot.lane.b32.xlu1 %v550_v27, %s2462_s23  ;;  %v762_v37 = vmul.f32 %v2966_v7, %v3047_v63 }
 0x1c1   : > { %600 = vrot.lane.b32.xlu0 %v553_v34, %s2462_s23  ;;  %598 = vrot.lane.b32.xlu1 %v552_v33, %s2462_s23  ;;  %v3132_v43 = vpop.permute.xlu0 %572  ;;  %v3134_v44 = vpop.permute.xlu1 %570  ;;  %v967_v33 = vmul.f32 %v2916_v48, %v3066_v14  ;;  %s2369_s23 = sshll.u32 %s2467_s8, 4  ;;  %s2370_s23 = int_to_ptr.vmem [resolvable:$false] %s2369_s23 }
 0x1c2   : > { %p2372_p13 = scmp.lt.s32.totalorder %s3419_s10, %s2370_s23 }
 0x1c5   : > { %798 = vrot.lane.b32.xlu0 %v757_v38, %s2464_s22  ;;  %796 = vrot.lane.b32.xlu1 %v756_v40, %s2464_s22  ;;  %v3144_v50 = vpop.permute.xlu0 %576  ;;  %v3146_v47 = vpop.permute.xlu1 %574  ;;  %v966_v38 = vmul.f32 %v2916_v48, %v3064_v13  ;;  %v866_v48 = vmul.f32 %v2991_v19, %v3100_v23 }
 0x1c9   : > { %802 = vrot.lane.b32.xlu0 %v759_v35, %s2464_s22  ;;  %800 = vrot.lane.b32.xlu1 %v758_v25, %s2464_s22  ;;  %v968_v35 = vmul.f32 %v2976_v12, %v3074_v15 }
 0x1cd   : > { %701 = vrot.lane.b32.xlu0 %v656_v42, %s2463_s28  ;;  %699 = vrot.lane.b32.xlu1 %v655_v30, %s2463_s28  ;;  %v865_v42 = vmul.f32 %v2991_v19, %v3033_v54  ;;  %v868_v30 = vmul.f32 %v2942_v59, %v3108_v32 }
 0x1d1   : > { %705 = vrot.lane.b32.xlu0 %v658_v53, %s2463_s28  ;;  %703 = vrot.lane.b32.xlu1 %v657_v61, %s2463_s28  ;;  %v867_v53 = vmul.f32 %v2942_v59, %v3047_v63  ;;  %v973_v59 = vmul.f32 %v3007_v28, %v3108_v32  ;;  %s2371_s28 = scalar_lea.vmem %s2370_s23, 2048 }
 0x1d3   : > { %v3154_v62 = vpop.permute.xlu0 %677  ;;  %v3156_v41 = vpop.permute.xlu1 %675 }
 0x1d5   : > { %903 = vrot.lane.b32.xlu0 %v862_v2, %s2465_s9  ;;  %901 = vrot.lane.b32.xlu1 %v861_v4, %s2465_s9  ;;  %v971_v2 = vmul.f32 %v2999_v22, %v3100_v23  ;;  %v970_v4 = vmul.f32 %v2999_v22, %v3033_v54  ;;  %v603_v22 = vsel %vm602_vm4, %v3134_v44, %v3132_v43  ;;  %v1112_v54 = vld [vmem:[#allocation11 + $0x8] sm:$0xff]  ;;  %v1111_v23 = vld [vmem:[#allocation11] sm:$0xff] }
 0x1d6   : > { %v604_v43 = vsel %vm602_vm4, %v3146_v47, %v3144_v50  ;;  %v1116_v47 = vld [vmem:[#allocation11 + $0x28] sm:$0xff] }
 0x1d7   : > { %v3164_v8 = vpop.permute.xlu0 %681  ;;  %v3166_v55 = vpop.permute.xlu1 %679 }
 0x1d9   : > { %907 = vrot.lane.b32.xlu0 %v864_v10, %s2465_s9  ;;  %905 = vrot.lane.b32.xlu1 %v863_v45, %s2465_s9 }
 0x1db   : > { %v581_v60 = vpop.permute.xlu0 %580  ;;  %v579_v46 = vpop.permute.xlu1 %578 }
 0x1dc   : > { %v605_v24 = vsel %vm602_vm4, %v579_v46, %v581_v60  ;;  %v972_v60 = vmul.f32 %v3007_v28, %v3047_v63  ;;  %v498_v46 = vmul.f32 %v2864_v26, %v2972_v11  ;;  %v708_v28 = vsel %vm707_vm5, %v3156_v41, %v3154_v62  ;;  %v1114_v26 = vld [vmem:[#allocation11 + $0x18] sm:$0xff] }
 0x1dd   : > { %v3180_v18 = vadd.f32 %v605_v24, %v3038_v57  ;;  %806 = vrot.lane.b32.xlu0 %v761_v52, %s2464_s22  ;;  %804 = vrot.lane.b32.xlu1 %v760_v17, %s2464_s22  ;;  %v1113_v17 = vld [vmem:[#allocation11 + $0x10] sm:$0xff]  ;;  %v499_v24 = vmul.f32 %v2876_v31, %v3027_v49  ;;  %v709_v62 = vsel %vm707_vm5, %v3166_v55, %v3164_v8 }
 0x1de   : > { %v619_v63 = vadd.f32 %v603_v22, %v498_v46  ;;  %v1121_v22 = vld [vmem:[#allocation14 + $0x10] sm:$0xff] }
 0x1df   : > { %v585_v56 = vpop.permute.xlu0 %584  ;;  %v583_v29 = vpop.permute.xlu1 %582 }
 0x1e0   : > { %v606_v27 = vsel %vm602_vm4, %v583_v29, %v585_v56  ;;  %v724_v56 = vadd.f32 %v708_v28, %v619_v63 }
 0x1e1   : > { %v3190_v0 = vadd.f32 %v606_v27, %v2983_v16  ;;  %810 = vrot.lane.b32.xlu0 %v763_v21, %s2464_s22  ;;  %808 = vrot.lane.b32.xlu1 %v762_v37, %s2464_s22  ;;  %v969_v16 = vmul.f32 %v2976_v12, %v3076_v51  ;;  %v620_v37 = vadd.f32 %v604_v43, %v499_v24 }
 0x1e3   : > { %v783_v57 = vpop.permute.xlu0 %782  ;;  %v781_v34 = vpop.permute.xlu1 %780 }
 0x1e4   : > { %v813_v44 = vsel %vm812_vm6, %v781_v34, %v783_v57  ;;  %v1115_v57 = vld [vmem:[#allocation11 + $0x20] sm:$0xff]  ;;  %v725_v34 = vadd.f32 %v709_v62, %v620_v37 }
 0x1e5   : > { %1008 = vrot.lane.b32.xlu0 %v967_v33, %s2466_s13  ;;  %1006 = vrot.lane.b32.xlu1 %v966_v38, %s2466_s13  ;;  %v829_v27 = vadd.f32 %v813_v44, %v724_v56 }
 0x1e7   : > { %v787_v7 = vpop.permute.xlu0 %786  ;;  %v785_v40 = vpop.permute.xlu1 %784 }
 0x1e8   : > { %v814_v50 = vsel %vm812_vm6, %v785_v40, %v787_v7 }
 0x1e9   : > { %1012 = vrot.lane.b32.xlu0 %v969_v16, %s2466_s13  ;;  %1010 = vrot.lane.b32.xlu1 %v968_v35, %s2466_s13  ;;  %v830_v8 = vadd.f32 %v814_v50, %v725_v34 }
 0x1eb   : > { %v3206_v14 = vpop.permute.xlu0 %685  ;;  %v3208_v25 = vpop.permute.xlu1 %683 }
 0x1ed   : > { %911 = vrot.lane.b32.xlu0 %v866_v48, %s2465_s9  ;;  %909 = vrot.lane.b32.xlu1 %v865_v42, %s2465_s9  ;;  %v1118_v48 = vld [vmem:[#allocation11 + $0x38] sm:$0xff]  ;;  %v1117_v42 = vld [vmem:[#allocation11 + $0x30] sm:$0xff] }
 0x1ef   : > { %v3216_v51 = vpop.permute.xlu0 %689  ;;  %v3218_v12 = vpop.permute.xlu1 %687 }
 0x1f0   : > { %v711_v56 = vsel %vm707_vm5, %v3218_v12, %v3216_v51 }
 0x1f1   : > { %915 = vrot.lane.b32.xlu0 %v868_v30, %s2465_s9  ;;  %913 = vrot.lane.b32.xlu1 %v867_v53, %s2465_s9 }
 0x1f3   : > { %v888_v61 = vpop.permute.xlu0 %887  ;;  %v886_v19 = vpop.permute.xlu1 %885 }
 0x1f4   : > { %v918_v41 = vsel %vm917_vm7, %v886_v19, %v888_v61 }
 0x1f5   : > { %1016 = vrot.lane.b32.xlu0 %v971_v2, %s2466_s13  ;;  %1014 = vrot.lane.b32.xlu1 %v970_v4, %s2466_s13  ;;  %v934_v31 = vadd.f32 %v918_v41, %v829_v27  ;;  %v1120_v2 = vld [vmem:[#allocation14 + $0x8] sm:$0xff]  ;;  %v1119_v4 = vld [vmem:[#allocation14] sm:$0xff]  ;;  %v727_v27 = vadd.f32 %v711_v56, %v3190_v0 }
 0x1f7   : > { %v892_v10 = vpop.permute.xlu0 %891  ;;  %v890_v45 = vpop.permute.xlu1 %889 }
 0x1f8   : > { %v919_v16 = vsel %vm917_vm7, %v890_v45, %v892_v10 }
 0x1f9   : > { %1020 = vrot.lane.b32.xlu0 %v973_v59, %s2466_s13  ;;  %1018 = vrot.lane.b32.xlu1 %v972_v60, %s2466_s13  ;;  %v935_v30 = vadd.f32 %v919_v16, %v830_v8  ;;  %v1122_v60 = vld [vmem:[#allocation14 + $0x18] sm:$0xff] }
 0x1fb   : > { %v3243_v52 = vpop.permute.xlu0 %790  ;;  %v3245_v32 = vpop.permute.xlu1 %788 }
 0x1fd   : > { %1130 = vperm.xlu0 %2165, %v1112_v54   ;;  %1125 = vperm.xlu1 %2166, %v1111_v23  }
 0x1ff   : > { %v795_v29 = vpop.permute.xlu0 %794  ;;  %v793_v21 = vpop.permute.xlu1 %792 }
 0x200   : > { %v816_v37 = vsel %vm812_vm6, %v793_v21, %v795_v29 }
 0x201   : > { %1140 = vperm.xlu0 %2165, %v1114_v26   ;;  %1135 = vperm.xlu1 %2166, %v1113_v17  }
 0x203   : > { %v993_v33 = vpop.permute.xlu0 %992  ;;  %v991_v38 = vpop.permute.xlu1 %990 }
 0x204   : > { %v1023_v35 = vsel %vm1022_vm8, %v991_v38, %v993_v33 }
 0x205   : > { %v1039_v55 = vadd.f32 %v1023_v35, %v934_v31  ;;  %1150 = vperm.xlu0 %2165, %v1116_v47   ;;  %1145 = vperm.xlu1 %2166, %v1115_v57  }
 0x207   : > { %v1075_v53 = vadd.f32 %v3118_v36, %v1039_v55  ;;  %v997_v7 = vpop.permute.xlu0 %996  ;;  %v995_v40 = vpop.permute.xlu1 %994 }
 0x208   : > { %v1024_v61 = vsel %vm1022_vm8, %v995_v40, %v997_v7  ;;  %v3304_v7 = vld [vmem:[#allocation9 + $0x8] sm:$0xff]  ;;  %v3306_v40 = vld [vmem:[#allocation9 + $0x10] sm:$0xff] }
 0x209   : > { %v1040_v19 = vadd.f32 %v1024_v61, %v935_v30  ;;  %1160 = vperm.xlu0 %2165, %v1118_v48   ;;  %1155 = vperm.xlu1 %2166, %v1117_v42   ;;  %v1083_v10 = vmax.f32 %v1075_v53, 0.0 }
 0x20b   : > { %v1076_v45 = vadd.f32 %v3120_v39, %v1040_v19  ;;  %v3267_v54 = vadd.f32 %v1083_v10, %v2827_v3  ;;  %v710_v3 = vsel %vm707_vm5, %v3208_v25, %v3206_v14  ;;  %v3320_v10 = vld [vmem:[#allocation9 + $0x28] sm:$0xff] }
 0x20c   : > { %v726_v26 = vadd.f32 %v710_v3, %v3180_v18 }
 0x20d   : > { %v1084_v59 = vmax.f32 %v1076_v45, 0.0  ;;  %1308 = vperm.xlu0 %2165, %v1120_v2   ;;  %1303 = vperm.xlu1 %2166, %v1119_v4   ;;  %v3322_v45 = vld [vmem:[#allocation9 + $0x30] sm:$0xff] }
 0x20f   : > { %v3270_v23 = vadd.f32 %v1084_v59, %v2832_v5  ;;  %v815_v5 = vsel %vm812_vm6, %v3245_v32, %v3243_v52  ;;  %v832_v32 = vadd.f32 %v816_v37, %v727_v27 }
 0x210   : > { %v831_v41 = vadd.f32 %v815_v5, %v726_v26 }
 0x211   : > { %1318 = vperm.xlu0 %2165, %v1122_v60   ;;  %1313 = vperm.xlu1 %2166, %v1121_v22   ;;  %v1979_v46 = vpack.c.bf16 %v3270_v23, %v3267_v54  ;;  %v3328_v22 = vld [vmem:[#allocation9 + $0x38] sm:$0xff] }
 0x213   : > { %1980 = vmatprep.subr.bf16.mxu0 %v1979_v46 }
 0x214   : > { %1982 = vmatpush3.bf16.msra.mxu0 %v1979_v46 }
 0x218   : > { %v3274_v28 = vpop.permute.xlu0 %1072  ;;  %v3276_v63 = vpop.permute.xlu1 %1067 }
 0x21c   : > { %v896_v43 = vpop.permute.xlu0 %895  ;;  %v894_v44 = vpop.permute.xlu1 %893 }
 0x21d   : > { %v920_v62 = vsel %vm917_vm7, %v894_v44, %v896_v43 }
 0x21e   : > { %v936_v14 = vadd.f32 %v920_v62, %v831_v41 }
 0x220   : > { %v900_v17 = vpop.permute.xlu0 %899  ;;  %v898_v24 = vpop.permute.xlu1 %897 }
 0x221   : > { %v921_v52 = vsel %vm917_vm7, %v898_v24, %v900_v17 }
 0x222   : > { %v937_v57 = vadd.f32 %v921_v52, %v832_v32 }
 0x224   : > { %v1001_v25 = vpop.permute.xlu0 %1000  ;;  %v999_v50 = vpop.permute.xlu1 %998 }
 0x225   : > { %v1025_v18 = vsel %vm1022_vm8, %v999_v50, %v1001_v25 }
 0x226   : > { %v1041_v47 = vadd.f32 %v1025_v18, %v936_v14  ;;  %v502_v14 = vmul.f32 %v2972_v11, %v3064_v13 }
 0x228   : > { %v1077_v34 = vadd.f32 %v3276_v63, %v1041_v47  ;;  %v1005_v51 = vpop.permute.xlu0 %1004  ;;  %v1003_v12 = vpop.permute.xlu1 %1002  ;;  %v503_v47 = vmul.f32 %v3027_v49, %v3074_v15 }
 0x229   : > { %v1026_v31 = vsel %vm1022_vm8, %v1003_v12, %v1005_v51 }
 0x22a   : > { %v1042_v33 = vadd.f32 %v1026_v31, %v937_v57  ;;  %v1085_v29 = vmax.f32 %v1077_v34, 0.0 }
 0x22c   : > { %v1078_v0 = vadd.f32 %v3274_v28, %v1042_v33  ;;  %v589_v21 = vpop.permute.xlu0 %588  ;;  %v587_v38 = vpop.permute.xlu1 %586  ;;  %v3297_v55 = vadd.f32 %v1085_v29, %v2842_v9  ;;  %v3314_v9 = vld [vmem:[#allocation9 + $0x20] sm:$0xff] }
 0x22d   : > { %v607_v27 = vsel %vm602_vm4, %v587_v38, %v589_v21 }
 0x22e   : > { %v1086_v16 = vmax.f32 %v1078_v0, 0.0 }
 0x230   : > { %v593_v35 = vpop.permute.xlu0 %592  ;;  %v591_v8 = vpop.permute.xlu1 %590  ;;  %v3300_v48 = vadd.f32 %v1086_v16, %v2837_v6  ;;  %v3312_v6 = vld [vmem:[#allocation9 + $0x18] sm:$0xff] }
 0x231   : > { %v608_v18 = vsel %vm602_vm4, %v591_v8, %v593_v35 }
 0x232   : > { %v1983_v42 = vpack.c.bf16 %v3300_v48, %v3297_v55  ;;  %v624_v11 = vadd.f32 %v608_v18, %v503_v47 }
 0x234   : > { %v694_v30 = vpop.permute.xlu0 %693  ;;  %v692_v53 = vpop.permute.xlu1 %691  ;;  %1984 = vmatprep.subr.bf16.mxu0 %v1983_v42 }
 0x235   : > { %1986 = vmatpush3.bf16.msra.mxu0 %v1983_v42  ;;  %v712_v52 = vsel %vm707_vm5, %v692_v53, %v694_v30 }
 0x238   : > { %v698_v61 = vpop.permute.xlu0 %697  ;;  %v696_v19 = vpop.permute.xlu1 %695  ;;  %1904 = vmatmul.mubr.msk.f32.vlgmr.msra.gmra.mrb[0].mxu0 %vm1163_vm3, %v3304_v7 }
 0x239   : > { %1906 = vmatprep.mubr.msk.f32.mxu0 %vm1163_vm3, %v3306_v40  ;;  %v713_v12 = vsel %vm707_vm5, %v696_v19, %v698_v61 }
 0x23a   : > { %v729_v29 = vadd.f32 %v713_v12, %v624_v11 }
 0x23c   : > { %v597_v2 = vpop.permute.xlu0 %596  ;;  %v595_v4 = vpop.permute.xlu1 %594  ;;  %1907 = vmatmul.mubr.msk.f32.gmra.mrb[2].mxu0 %vm1163_vm3, %v3312_v6 }
 0x23d   : > { %1909 = vmatprep.mubr.msk.f32.mxu0 %vm1163_vm3, %v3314_v9 }
 0x240   : > { %v601_v59 = vpop.permute.xlu0 %600  ;;  %v599_v60 = vpop.permute.xlu1 %598  ;;  %1910 = vmatmul.mubr.msk.f32.gmra.mrb[4].mxu0 %vm1163_vm3, %v3320_v10 }
 0x241   : > { %1912 = vmatprep.mubr.msk.f32.mxu0 %vm1163_vm3, %v3322_v45 }
 0x244   : > { %v799_v46 = vpop.permute.xlu0 %798  ;;  %v797_v43 = vpop.permute.xlu1 %796  ;;  %1913 = vmatmul.mubr.msk.f32.gmra.mrb[6].mxu0 %vm1163_vm3, %v3328_v22 }
 0x245   : > { %1945 = vmatprep.mubr.msk.f32.mxu0 %vm1163_vm3, %v3092_v20  ;;  %v623_v20 = vadd.f32 %v607_v27, %v502_v14  ;;  %v817_v32 = vsel %vm812_vm6, %v797_v43, %v799_v46  ;;  %v609_v46 = vsel %vm602_vm4, %v595_v4, %v597_v2 }
 0x246   : > { %v625_v27 = vadd.f32 %v609_v46, %v3041_v58 }
 0x247   : > { %v728_v57 = vadd.f32 %v712_v52, %v623_v20 }
 0x248   : > { %v803_v44 = vpop.permute.xlu0 %802  ;;  %v801_v3 = vpop.permute.xlu1 %800 }
 0x249   : > { %v833_v13 = vadd.f32 %v817_v32, %v728_v57  ;;  %v818_v33 = vsel %vm812_vm6, %v801_v3, %v803_v44 }
 0x24a   : > { %v834_v15 = vadd.f32 %v818_v33, %v729_v29 }
 0x24c   : > { %v702_v5 = vpop.permute.xlu0 %701  ;;  %v700_v26 = vpop.permute.xlu1 %699 }
 0x250   : > { %v706_v17 = vpop.permute.xlu0 %705  ;;  %v704_v24 = vpop.permute.xlu1 %703 }
 0x254   : > { %v904_v56 = vpop.permute.xlu0 %903  ;;  %v902_v62 = vpop.permute.xlu1 %901 }
 0x255   : > { %v922_v31 = vsel %vm917_vm7, %v902_v62, %v904_v56  ;;  %v714_v62 = vsel %vm707_vm5, %v700_v26, %v702_v5 }
 0x256   : > { %v938_v0 = vadd.f32 %v922_v31, %v833_v13  ;;  %v730_v20 = vadd.f32 %v714_v62, %v625_v27 }
 0x258   : > { %v908_v41 = vpop.permute.xlu0 %907  ;;  %v906_v37 = vpop.permute.xlu1 %905 }
 0x259   : > { %v923_v16 = vsel %vm917_vm7, %v906_v37, %v908_v41  ;;  %v1051_v41 = vld [vmem:[%s2792_s29 + $0x20] sm:$0xff]  ;;  %v1052_v37 = vld [vmem:[%s2792_s29 + $0x28] sm:$0xff] }
 0x25a   : > { %v939_v8 = vadd.f32 %v923_v16, %v834_v15 }
 0x25c   : > { %v807_v25 = vpop.permute.xlu0 %806  ;;  %v805_v50 = vpop.permute.xlu1 %804 }
 0x25d   : > { %v819_v52 = vsel %vm812_vm6, %v805_v50, %v807_v25 }
 0x25e   : > { %v835_v47 = vadd.f32 %v819_v52, %v730_v20 }
 0x260   : > { %v811_v34 = vpop.permute.xlu0 %810  ;;  %v809_v51 = vpop.permute.xlu1 %808 }
 0x264   : > { %v1009_v21 = vpop.permute.xlu0 %1008  ;;  %v1007_v38 = vpop.permute.xlu1 %1006 }
 0x265   : > { %v1027_v49 = vsel %vm1022_vm8, %v1007_v38, %v1009_v21  ;;  %v1053_v21 = vld [vmem:[%s2792_s29 + $0x30] sm:$0xff]  ;;  %v1054_v38 = vld [vmem:[%s2792_s29 + $0x38] sm:$0xff]  ;;  %s2365_s29 = scalar_lea.vmem %s3419_s10, 1024 }
 0x266   : > { %v1043_v35 = vadd.f32 %v1027_v49, %v938_v0  ;;  %p2366_p6 = scmp.ne.s32.totalorder %s3419_s10, %s2365_s29  ;;  %p2373_p0 = scmp.lt.s32.totalorder %s2371_s28, %s2365_s29 }
 0x268   : > { %v1079_v42 = vadd.f32 %v3118_v36, %v1043_v35  ;;  %v1013_v30 = vpop.permute.xlu0 %1012  ;;  %v1011_v53 = vpop.permute.xlu1 %1010  ;;  %v610_v36 = vsel %vm602_vm4, %v599_v60, %v601_v59  ;;  %v820_v59 = vsel %vm812_vm6, %v809_v51, %v811_v34  ;;  %p2367_p12 = pnand %p2366_p6, %p3502_p9  ;;  %p2374_p2 = por %p2373_p0, %p2372_p13 }
 0x269   : > { %v1028_v61 = vsel %vm1022_vm8, %v1011_v53, %v1013_v30  ;;  %v626_v26 = vadd.f32 %v610_v36, %v3052_v1 }
 0x26a   : > { %v1044_v19 = vadd.f32 %v1028_v61, %v939_v8  ;;  %v1087_v43 = vmax.f32 %v1079_v42, 0.0  ;;  %p2368_p1 = pneg %p2367_p12 }
 0x26c   : > { %v1080_v44 = vadd.f32 %v3120_v39, %v1044_v19  ;;  %v912_v3 = vpop.permute.xlu0 %911  ;;  %v910_v56 = vpop.permute.xlu1 %909  ;;  %v3357_v2 = vadd.f32 %v1087_v43, %v1051_v41  ;;  %v715_v39 = vsel %vm707_vm5, %v704_v24, %v706_v17  ;;  %p2375_p8 = pnand %p2374_p2, %p2368_p1 }
 0x26d   : > { %v924_v5 = vsel %vm917_vm7, %v910_v56, %v912_v3  ;;  %v731_v60 = vadd.f32 %v715_v39, %v626_v26 }
 0x26e   : > { %v1088_v14 = vmax.f32 %v1080_v44, 0.0  ;;  %v940_v25 = vadd.f32 %v924_v5, %v835_v47 }
 0x26f   : > { %v836_v24 = vadd.f32 %v820_v59, %v731_v60 }
 0x270   : > { %v916_v18 = vpop.permute.xlu0 %915  ;;  %v914_v32 = vpop.permute.xlu1 %913  ;;  %v3359_v4 = vadd.f32 %v1088_v14, %v1052_v37 }
 0x271   : > { %v925_v12 = vsel %vm917_vm7, %v914_v32, %v916_v18 }
 0x272   : > { %v2003_v58 = vpack.c.bf16 %v3359_v4, %v3357_v2  ;;  %v941_v31 = vadd.f32 %v925_v12, %v836_v24 }
 0x274   : > { %v1017_v50 = vpop.permute.xlu0 %1016  ;;  %v1015_v57 = vpop.permute.xlu1 %1014  ;;  %2004 = vmatprep.subr.bf16.mxu0 %v2003_v58 }
 0x275   : > { %v1029_v17 = vsel %vm1022_vm8, %v1015_v57, %v1017_v50  ;;  %2006 = vmatpush3.bf16.msra.mxu0 %v2003_v58  ;;  %v1109_v50 = vld [vmem:[#allocation12 + $0x10] sm:$0xff]  ;;  %v1110_v57 = vld [vmem:[#allocation12 + $0x18] sm:$0xff] }
 0x276   : > { %v1045_v1 = vadd.f32 %v1029_v17, %v940_v25  ;;  %v1108_v25 = vld [vmem:[#allocation12 + $0x8] sm:$0xff] }
 0x278   : > { %v1081_v11 = vadd.f32 %v3276_v63, %v1045_v1  ;;  %v1021_v13 = vpop.permute.xlu0 %1020  ;;  %v1019_v33 = vpop.permute.xlu1 %1018 }
 0x279   : > { %v1030_v34 = vsel %vm1022_vm8, %v1019_v33, %v1021_v13 }
 0x27a   : > { %v1046_v51 = vadd.f32 %v1030_v34, %v941_v31  ;;  %v1089_v29 = vmax.f32 %v1081_v11, 0.0 }
 0x27c   : > { %v1082_v0 = vadd.f32 %v3274_v28, %v1046_v51  ;;  %v3374_v49 = vadd.f32 %v1089_v29, %v1053_v21  ;;  %v1107_v28 = vld [vmem:[#allocation12] sm:$0xff]  ;;  %v1131_v63 = vpop.permute.xlu0 %1130 }
 0x27d   : > { %1931 = vmatprep.mubr.msk.f32.mxu1 %vm1321_vm9, %v1107_v28 }
 0x27e   : > { %v1090_v16 = vmax.f32 %v1082_v0, 0.0 }
 0x280   : > { %v3376_v15 = vadd.f32 %v1090_v16, %v1054_v38 }
 0x282   : > { %v2007_v35 = vpack.c.bf16 %v3376_v15, %v3374_v49 }
 0x284   : > { %2008 = vmatprep.subr.bf16.mxu0 %v2007_v35 }
 0x285   : > { %2010 = vmatpush3.bf16.msra.mxu0 %v2007_v35 }
 0x288   : > { %1946 = vmatmul.mubr.msk.f32.vlgmr.msra.gmra.mrb[8].mxu0 %vm1163_vm3, %v3304_v7  ;;  %v1126_v7 = vpop.permute.xlu1 %1125 }
 0x289   : > { %1948 = vmatprep.mubr.msk.f32.mxu0 %vm1163_vm3, %v3306_v40  ;;  %v1141_v40 = vpop.permute.xlu0 %1140 }
 0x28c   : > { %1949 = vmatmul.mubr.msk.f32.gmra.mrb[10].mxu0 %vm1163_vm3, %v3312_v6  ;;  %v1136_v8 = vpop.permute.xlu1 %1135 }
 0x28d   : > { %1951 = vmatprep.mubr.msk.f32.mxu0 %vm1163_vm3, %v3314_v9  ;;  %v1151_v46 = vpop.permute.xlu0 %1150 }
 0x290   : > { %1952 = vmatmul.mubr.msk.f32.gmra.mrb[12].mxu0 %vm1163_vm3, %v3320_v10  ;;  %v1146_v44 = vpop.permute.xlu1 %1145 }
 0x291   : > { %1954 = vmatprep.mubr.msk.f32.mxu0 %vm1163_vm3, %v3322_v45  ;;  %v1161_v52 = vpop.permute.xlu0 %1160 }
 0x294   : > { %1955 = vmatmul.mubr.msk.f32.gmra.mrb[14].mxu0 %vm1163_vm3, %v3328_v22  ;;  %v1156_v32 = vpop.permute.xlu1 %1155 }
 0x30b   : > { %v1905_v6 = vpop.f32.mrb[0].mxu0 }
 0x30c   : > { %v1260_v42 = vadd.f32 %v1905_v6, %v1131_v63  ;;  %v1254_v9 = vpop.f32.mrb[1].mxu0 }
 0x30d   : > { %v1255_v30 = vadd.f32 %v1254_v9, %v1126_v7 }
 0x30e   : > { %v1294_v53 = vmax.f32 %v1260_v42, 0.0 }
 0x30f   : > { %v1293_v10 = vmax.f32 %v1255_v30, 0.0  ;;  %v1908_v61 = vpop.f32.mrb[2].mxu0 }
 0x310   : > { %v1270_v19 = vadd.f32 %v1908_v61, %v1141_v40  ;;  %v1264_v45 = vpop.f32.mrb[3].mxu0 }
 0x311   : > { %v1265_v43 = vadd.f32 %v1264_v45, %v1136_v8  ;;  %v1987_v22 = vpack.c.bf16 %v1294_v53, %v1293_v10  ;;  %v1304_v45 = vpop.permute.xlu1 %1303 }
 0x312   : > { %v1296_v3 = vmax.f32 %v1270_v19, 0.0  ;;  %v1309_v19 = vpop.permute.xlu0 %1308 }
 0x313   : > { %v1295_v56 = vmax.f32 %v1265_v43, 0.0  ;;  %v1911_v62 = vpop.f32.mrb[4].mxu0  ;;  %1988 = vmatprep.subr.bf16.mxu1 %v1987_v22 }
 0x314   : > { %v1280_v41 = vadd.f32 %v1911_v62, %v1151_v46  ;;  %v1274_v37 = vpop.f32.mrb[5].mxu0  ;;  %1990 = vmatpush3.bf16.msra.mxu1 %v1987_v22 }
 0x315   : > { %v1991_v27 = vpack.c.bf16 %v1296_v3, %v1295_v56  ;;  %v1275_v14 = vadd.f32 %v1274_v37, %v1146_v44  ;;  %v1314_v37 = vpop.permute.xlu1 %1313 }
 0x316   : > { %v1298_v36 = vmax.f32 %v1280_v41, 0.0  ;;  %v1319_v56 = vpop.permute.xlu0 %1318 }
 0x317   : > { %v1297_v20 = vmax.f32 %v1275_v14, 0.0  ;;  %v1914_v18 = vpop.f32.mrb[6].mxu0  ;;  %1992 = vmatprep.subr.bf16.mxu1 %v1991_v27 }
 0x318   : > { %v1290_v39 = vadd.f32 %v1914_v18, %v1161_v52  ;;  %v1284_v5 = vpop.f32.mrb[7].mxu0  ;;  %1994 = vmatpush3.bf16.msra.mxu1 %v1991_v27 }
 0x319   : > { %v1995_v26 = vpack.c.bf16 %v1298_v36, %v1297_v20  ;;  %v1285_v47 = vadd.f32 %v1284_v5, %v1156_v32 }
 0x31a   : > { %v1300_v58 = vmax.f32 %v1290_v39, 0.0 }
 0x31b   : > { %v1299_v59 = vmax.f32 %v1285_v47, 0.0  ;;  %1996 = vmatprep.subr.bf16.mxu1 %v1995_v26 }
 0x31c   : > { %1998 = vmatpush3.bf16.msra.mxu1 %v1995_v26 }
 0x31d   : > { %v1999_v60 = vpack.c.bf16 %v1300_v58, %v1299_v59 }
 0x31f   : > { %2000 = vmatprep.subr.bf16.mxu1 %v1999_v60 }
 0x320   : > { %2002 = vmatpush3.bf16.msra.mxu1 %v1999_v60 }
 0x323   : > { %1932 = vmatmul.mubr.msk.f32.vlgmr.msra.gmra.mrb[0].mxu1 %vm1321_vm9, %v1108_v25 }
 0x324   : > { %1934 = vmatprep.mubr.msk.f32.mxu1 %vm1321_vm9, %v1109_v50 }
 0x327   : > { %1935 = vmatmul.mubr.msk.f32.gmra.mrb[2].mxu1 %vm1321_vm9, %v1110_v57 }
 0x328   : > { %1973 = vmatprep.mubr.msk.f32.mxu1 %vm1321_vm9, %v1107_v28 }
 0x35b   : > { %v1947_v12 = vpop.f32.mrb[8].mxu0 }
 0x35c   : > { %v1503_v17 = vadd.f32 %v1947_v12, %v1131_v63  ;;  %v1497_v24 = vpop.f32.mrb[9].mxu0 }
 0x35d   : > { %v1498_v1 = vadd.f32 %v1497_v24, %v1126_v7 }
 0x35e   : > { %v1537_v31 = vmax.f32 %v1503_v17, 0.0 }
 0x35f   : > { %v1536_v11 = vmax.f32 %v1498_v1, 0.0  ;;  %v1950_v13 = vpop.f32.mrb[10].mxu0 }
 0x360   : > { %v1513_v33 = vadd.f32 %v1950_v13, %v1141_v40  ;;  %v1507_v34 = vpop.f32.mrb[11].mxu0 }
 0x361   : > { %v2011_v51 = vpack.c.bf16 %v1537_v31, %v1536_v11  ;;  %v1508_v29 = vadd.f32 %v1507_v34, %v1136_v8 }
 0x362   : > { %v1539_v0 = vmax.f32 %v1513_v33, 0.0 }
 0x363   : > { %v1538_v21 = vmax.f32 %v1508_v29, 0.0  ;;  %v1953_v38 = vpop.f32.mrb[12].mxu0  ;;  %2012 = vmatprep.subr.bf16.mxu1 %v2011_v51 }
 0x364   : > { %v1523_v16 = vadd.f32 %v1953_v38, %v1151_v46  ;;  %v1517_v35 = vpop.f32.mrb[13].mxu0  ;;  %2014 = vmatpush3.bf16.msra.mxu1 %v2011_v51 }
 0x365   : > { %v2015_v6 = vpack.c.bf16 %v1539_v0, %v1538_v21  ;;  %v1518_v28 = vadd.f32 %v1517_v35, %v1146_v44 }
 0x366   : > { %v1541_v42 = vmax.f32 %v1523_v16, 0.0 }
 0x367   : > { %v1540_v63 = vmax.f32 %v1518_v28, 0.0  ;;  %v1956_v9 = vpop.f32.mrb[14].mxu0  ;;  %2016 = vmatprep.subr.bf16.mxu1 %v2015_v6 }
 0x368   : > { %v1533_v7 = vadd.f32 %v1956_v9, %v1161_v52  ;;  %v1527_v30 = vpop.f32.mrb[15].mxu0  ;;  %2018 = vmatpush3.bf16.msra.mxu1 %v2015_v6 }
 0x369   : > { %v2019_v40 = vpack.c.bf16 %v1541_v42, %v1540_v63  ;;  %v1528_v53 = vadd.f32 %v1527_v30, %v1156_v32 }
 0x36a   : > { %v1543_v10 = vmax.f32 %v1533_v7, 0.0 }
 0x36b   : > { %v1542_v8 = vmax.f32 %v1528_v53, 0.0  ;;  %2020 = vmatprep.subr.bf16.mxu1 %v2019_v40 }
 0x36c   : > { %2022 = vmatpush3.bf16.msra.mxu1 %v2019_v40 }
 0x36d   : > { %v2023_v61 = vpack.c.bf16 %v1543_v10, %v1542_v8 }
 0x36f   : > { %2024 = vmatprep.subr.bf16.mxu1 %v2023_v61 }
 0x370   : > { %2026 = vmatpush3.bf16.msra.mxu1 %v2023_v61 }
 0x373   : > { %1974 = vmatmul.mubr.msk.f32.vlgmr.msra.gmra.mrb[4].mxu1 %vm1321_vm9, %v1108_v25 }
 0x374   : > { %1976 = vmatprep.mubr.msk.f32.mxu1 %vm1321_vm9, %v1109_v50 }
 0x377   : > { %1977 = vmatmul.mubr.msk.f32.gmra.mrb[6].mxu1 %vm1321_vm9, %v1110_v57 }
 0x3f6   : > { %v1933_v46 = vpop.f32.mrb[0].mxu1 }
 0x3f7   : > { %v1406_v43 = vadd.f32 %v1933_v46, %v1309_v19  ;;  %v1400_v22 = vpop.f32.mrb[1].mxu1 }
 0x3f8   : > { %v1401_v44 = vadd.f32 %v1400_v22, %v1304_v45 }
 0x3f9   : > { %v1420_v3 = vmax.f32 %v1406_v43, 0.0 }
 0x3fa   : > { %v1419_v62 = vmax.f32 %v1401_v44, 0.0  ;;  %v1936_v41 = vpop.f32.mrb[2].mxu1 }
 0x3fb   : > { %v1424_v27 = vadd.f32 %v1420_v3, %v3270_v23  ;;  %v1416_v14 = vadd.f32 %v1936_v41, %v1319_v56  ;;  %v1410_v36 = vpop.f32.mrb[3].mxu1 }
 0x3fc   : > { %v1423_v52 = vadd.f32 %v1419_v62, %v3267_v54  ;;  %v1411_v20 = vadd.f32 %v1410_v36, %v1314_v37 }
 0x3fd   : > { %1428 = vst [vmem:[%s3406_s20 + $0x8] sm:$0xff] %v1424_v27  ;;  %v1422_v18 = vmax.f32 %v1416_v14, 0.0 }
 0x3fe   : > { %1427 = vst [vmem:[%s3406_s20] sm:$0xff] %v1423_v52  ;;  %v1421_v32 = vmax.f32 %v1411_v20, 0.0 }
 0x3ff   : > { %v1426_v39 = vadd.f32 %v1422_v18, %v3300_v48 }
 0x400   : > { %v1425_v23 = vadd.f32 %v1421_v32, %v3297_v55 }
 0x401   : > { %1430 = vst [vmem:[%s3406_s20 + $0x18] sm:$0xff] %v1426_v39 }
 0x402   : > { %1429 = vst [vmem:[%s3406_s20 + $0x10] sm:$0xff] %v1425_v23 }
 0x446   : > { %v1975_v54 = vpop.f32.mrb[4].mxu1 }
 0x447   : > { %v1616_v5 = vadd.f32 %v1975_v54, %v1309_v19  ;;  %v1610_v26 = vpop.f32.mrb[5].mxu1 }
 0x448   : > { %v1611_v47 = vadd.f32 %v1610_v26, %v1304_v45 }
 0x449   : > { %v1630_v58 = vmax.f32 %v1616_v5, 0.0 }
 0x44a   : > { %v1629_v59 = vmax.f32 %v1611_v47, 0.0  ;;  %v1978_v60 = vpop.f32.mrb[6].mxu1 }
 0x44b   : > { %v1634_v25 = vadd.f32 %v1630_v58, %v3359_v4  ;;  %v1626_v48 = vadd.f32 %v1978_v60, %v1319_v56  ;;  %v1620_v55 = vpop.f32.mrb[7].mxu1 }
 0x44c   : > { %v1633_v50 = vadd.f32 %v1629_v59, %v3357_v2  ;;  %v1621_v57 = vadd.f32 %v1620_v55, %v1314_v37 }
 0x44d   : > { %1834 = vst [vmem:[%s3406_s20 + $0x28] sm:$0xff] %v1634_v25  ;;  %v1632_v12 = vmax.f32 %v1626_v48, 0.0 }
 0x44e   : > { %1833 = vst [vmem:[%s3406_s20 + $0x20] sm:$0xff] %v1633_v50  ;;  %v1631_v17 = vmax.f32 %v1621_v57, 0.0 }
 0x44f   : > { %v1636_v24 = vadd.f32 %v1632_v12, %v3376_v15 }
 0x450   : > { %v1635_v2 = vadd.f32 %v1631_v17, %v3374_v49 }
 0x451   : > { %1836 = vst [vmem:[%s3406_s20 + $0x38] sm:$0xff] %v1636_v24 }
 0x452   : > { %1835 = vst [vmem:[%s3406_s20 + $0x30] sm:$0xff] %v1635_v2 }
 0x453   : > { %2378 = shalt.err (!%p2375_p8)
}
 0x454   : > { %s2379_s22 = scalar_lea.hbm %s3426_s16, 1024  ;;  %s2383_s20 = scalar_lea.hbm %s3480_s7, 2048 }
 0x455   : > { %p2380_p4 = scmp.ne.s32.totalorder %s3426_s16, %s2379_s22  ;;  %p2384_p3 = scmp.lt.u32.totalorder %s3426_s16, %s3480_s7 }
 0x456   : > { %p2385_p5 = scmp.lt.u32.totalorder %s2383_s20, %s2379_s22  ;;  %p2387_p6 = scmp.lt.u32.totalorder %s2379_s22, %s3426_s16 }
 0x457   : > { %p2381_p10 = pnand %p2380_p4, %p3502_p9 }
 0x458   : > { %p2386_p7 = por %p2385_p5, %p2384_p3 }
 0x459   : > { %p2382_p11 = pneg %p2381_p10 }
 0x45a   : > { %p2388_p12 = por %p2387_p6, %p2386_p7 }
 0x45c   : > { %p2389_p1 = pnand %p2388_p12, %p2382_p11 }
 0x45e   : > { %2392 = shalt.err (!%p2389_p1)
}
 0x45f   : > { %s2468_s11 = smov 128   ;;  %s2469_s29 = smov 8  }
 0x460   : > { %2053 = dma.vmem_to_hbm [thread:$0]  (%p3502_p9), %s3419_s10, 1024, %s3426_s16, %s1643_s30, %s2468_s11, %s2468_s11, %s2469_s29  }
 0x461 PF: > { %s1672_s8 = sand.u32 1, %s2431_s24   ;;  %p3503_p13 = scmp.ne.s32.totalorder %s3492_s18, 0 }
 0x462   : > { %p3504_p0 = scmp.ge.s32.totalorder %s2443_s27, 2  ;;  %s1673_s23 = scalar_lea.sflag [#allocation5], %s1672_s8 }
 0x464   : > { %p2079_p2 = pnand %p3504_p0, %p3503_p13 }
 0x466   : > { %2426 = dma.done.wait (!%p2079_p2), %s1673_s23, 1024  }
 0x467   : > { %2428 = vsyncadd (!%p2079_p2), %s1673_s23, 4294966272  ;;  %p23_p8 = scmp.ge.s32.totalorder %s2704_s19, 4   ;;  %s3505_s24 = smov %s2435_s25 }
 0x468   : > { %s3506_s25 = smov %s2439_s26  ;;  %s3507_s26 = smov %s2715_s12 }
 0x469   : > { %s3508_s27 = smov %s2704_s19  ;;  %25 = sbr.rel (!%p23_p8) target bundleno = 8 (0x8), region = 118 }
 0x470   :  { %1678 = vsyncpa [#allocation4], 1 }
 0x471   :  { %1680 = vsyncpa [#allocation4 + $0x1], 1 }
 0x472   :  { %1681 = vsyncpa [#allocation7], 1 }
 0x473   :  { %1682 = vsyncpa [#allocation10], 1 }
 0x474   :  { %1683 = vsyncpa [#allocation13], 1 }
 0x475   :  { %1684 = vsyncpa [#allocation5], 1 }
 0x476   :  { %1686 = vsyncpa [#allocation5 + $0x1], 1 }

</bundles_post_ra>
